<compile_context>
chip_gen: v5e
topology: v5e:2x2
jax: 0.10.0
libtpu: 0.0.40
codegen_flags: <defaults>
</compile_context>

<pallas_src>
import functools

import jax
import jax.numpy as jnp
from jax import lax
from jax.experimental import pallas as pl
from jax.experimental.pallas import tpu as pltpu


# ---------------------------------------------------------------------------
# Generation-aware budgets / tile targets
# ---------------------------------------------------------------------------
def _vmem_capacity_bytes():
    try:
        info = pltpu.get_tpu_info()
        for attr in ("vmem_capacity_bytes", "vmem_size_bytes", "vmem_bytes"):
            val = getattr(info, attr, None)
            if val:
                return int(val)
    except Exception:
        pass
    return 64 * 1024 * 1024  # conservative fallback: v7x-sized VMEM


_VMEM_CAP = _vmem_capacity_bytes()
_BIG_VMEM = _VMEM_CAP >= 100 * 1024 * 1024            # v5e / v6e (128 MiB)
VMEM_LIMIT = int(min(int(_VMEM_CAP * 0.65), 96 * 1024 * 1024))

# Projection (matmul) tile targets.
_TM_T, _TN_T, _TK_T = (512, 512, 1024) if _BIG_VMEM else (256, 256, 512)
# Flash-attention tile targets.
_TQ_T = 256 if _BIG_VMEM else 128
_TKV_T = 512


def _tile(dim, target, align):
    """Largest block size <= target that divides `dim` and is a multiple of
    `align`, falling back to the full dimension (always legal)."""
    if dim <= target:
        return dim
    t = (target // align) * align
    while t >= align:
        if dim % t == 0:
            return t
        t -= align
    return dim


def _round_up(n, m):
    return -(-n // m) * m


# ---------------------------------------------------------------------------
# Fused QKV projection: x @ [Wq | Wk | Wv] + b  ->  q, k, v  (three outputs)
# ---------------------------------------------------------------------------
def _qkv_kernel(x_ref, wq_ref, wk_ref, wv_ref, bq_ref, bk_ref, bv_ref,
                q_ref, k_ref, v_ref, accq, acck, accv):
    @pl.when(pl.program_id(2) == 0)
    def _init():
        accq[...] = jnp.zeros_like(accq)
        acck[...] = jnp.zeros_like(acck)
        accv[...] = jnp.zeros_like(accv)

    x = x_ref[...]  # shared x tile for the three matmuls
    accq[...] += jnp.dot(x, wq_ref[...], preferred_element_type=jnp.float32)
    acck[...] += jnp.dot(x, wk_ref[...], preferred_element_type=jnp.float32)
    accv[...] += jnp.dot(x, wv_ref[...], preferred_element_type=jnp.float32)

    @pl.when(pl.program_id(2) == pl.num_programs(2) - 1)
    def _finalize():
        q_ref[...] = (accq[...] + bq_ref[...].astype(jnp.float32)).astype(q_ref.dtype)
        k_ref[...] = (acck[...] + bk_ref[...].astype(jnp.float32)).astype(k_ref.dtype)
        v_ref[...] = (accv[...] + bv_ref[...].astype(jnp.float32)).astype(v_ref.dtype)


def qkv_proj(x2d, wq, wk, wv, bq, bk, bv):
    M, K = x2d.shape
    _, C = wq.shape
    tm = _tile(M, _TM_T, 16)     # 16-aligned: bf16 packs two rows per sublane
    tn = _tile(C, _TN_T, 128)
    tk = _tile(K, _TK_T, 128)
    grid = (M // tm, C // tn, K // tk)

    x_spec = pl.BlockSpec((tm, tk), lambda i, j, k: (i, k))
    w_spec = pl.BlockSpec((tk, tn), lambda i, j, k: (k, j))
    b_spec = pl.BlockSpec((1, tn), lambda i, j, k: (0, j))
    o_spec = pl.BlockSpec((tm, tn), lambda i, j, k: (i, j))
    out = jax.ShapeDtypeStruct((M, C), x2d.dtype)

    return pl.pallas_call(
        _qkv_kernel,
        out_shape=(out, out, out),
        grid=grid,
        in_specs=[x_spec, w_spec, w_spec, w_spec, b_spec, b_spec, b_spec],
        out_specs=(o_spec, o_spec, o_spec),
        scratch_shapes=[pltpu.VMEM((tm, tn), jnp.float32)] * 3,
        compiler_params=pltpu.CompilerParams(
            dimension_semantics=("parallel", "parallel", "arbitrary"),
            vmem_limit_bytes=VMEM_LIMIT),
    )(x2d, wq, wk, wv, bq, bk, bv)


# ---------------------------------------------------------------------------
# Generic tiled linear: y = x @ w + b  (used for the output projection)
# ---------------------------------------------------------------------------
def _linear_kernel(x_ref, w_ref, b_ref, o_ref, acc_ref):
    @pl.when(pl.program_id(2) == 0)
    def _init():
        acc_ref[...] = jnp.zeros_like(acc_ref)

    acc_ref[...] += jnp.dot(x_ref[...], w_ref[...],
                            preferred_element_type=jnp.float32)

    @pl.when(pl.program_id(2) == pl.num_programs(2) - 1)
    def _finalize():
        o_ref[...] = (acc_ref[...] + b_ref[...].astype(jnp.float32)).astype(o_ref.dtype)


def linear(x2d, w, b, out_dtype=None):
    M, K = x2d.shape
    _, N = w.shape
    out_dtype = x2d.dtype if out_dtype is None else out_dtype
    tm = _tile(M, _TM_T, 16)
    tn = _tile(N, _TN_T, 128)
    tk = _tile(K, _TK_T, 128)
    grid = (M // tm, N // tn, K // tk)

    return pl.pallas_call(
        _linear_kernel,
        out_shape=jax.ShapeDtypeStruct((M, N), out_dtype),
        grid=grid,
        in_specs=[pl.BlockSpec((tm, tk), lambda i, j, k: (i, k)),
                  pl.BlockSpec((tk, tn), lambda i, j, k: (k, j)),
                  pl.BlockSpec((1, tn), lambda i, j, k: (0, j))],
        out_specs=pl.BlockSpec((tm, tn), lambda i, j, k: (i, j)),
        scratch_shapes=[pltpu.VMEM((tm, tn), jnp.float32)],
        compiler_params=pltpu.CompilerParams(
            dimension_semantics=("parallel", "parallel", "arbitrary"),
            vmem_limit_bytes=VMEM_LIMIT),
    )(x2d, w, b)


# ---------------------------------------------------------------------------
# Flash-style multi-head attention with online softmax.
#   q, k, v, o are (B, N_pad, C) with C = H*D (heads folded into the lane dim).
#   The softmax scale is already folded into q (via the QKV weights).
#   State is head-major VMEM scratch: q_hmd (H,tq,D), m/l (H,tq,1), acc (H,tq,D).
# ---------------------------------------------------------------------------
def _flash_attn_kernel(q_ref, k_ref, v_ref, o_ref,
                       q_hmd, m_ref, l_ref, acc_ref,
                       *, num_heads, head_dim, n_valid, n_padded):
    ki = pl.program_id(2)

    @pl.when(ki == 0)
    def _init():
        m_ref[...] = jnp.full_like(m_ref, -jnp.inf)
        l_ref[...] = jnp.zeros_like(l_ref)
        acc_ref[...] = jnp.zeros_like(acc_ref)
        # Head-major relayout of the q tile: done ONCE per q tile, not per kv step.
        q = q_ref[0]                                        # (tq, H*D) bf16
        for h in range(num_heads):
            q_hmd[h] = q[:, h * head_dim:(h + 1) * head_dim]

    k = k_ref[0]                                            # (tkv, H*D) bf16
    v = v_ref[0]                                            # (tkv, H*D) bf16
    tkv = k.shape[0]

    # Mask bias for padded KV positions (compile-time: only if padding exists).
    if n_valid < n_padded:
        kv_idx = ki * tkv + lax.broadcasted_iota(jnp.int32, (1, tkv), 1)
        bias = jnp.where(kv_idx < n_valid, 0.0, -1e30).astype(jnp.float32)
    else:
        bias = None

    for h in range(num_heads):
        sl = slice(h * head_dim, (h + 1) * head_dim)
        # s[q, kv] = sum_d q[q, d] * k[kv, d] -- contract on D (no explicit .T).
        s = lax.dot_general(q_hmd[h], k[:, sl], (((1,), (1,)), ((), ())),
                            preferred_element_type=jnp.float32)     # (tq, tkv) f32
        if bias is not None:
            s = s + bias
        m_prev = m_ref[h]                                            # (tq, 1)
        m_new = jnp.maximum(m_prev, jnp.max(s, axis=-1, keepdims=True))
        alpha = jnp.exp(m_prev - m_new)                              # f32
        p = jnp.exp(s - m_new)                                       # f32 softmax math
        l_ref[h] = alpha * l_ref[h] + jnp.sum(p, axis=-1, keepdims=True)
        pv = lax.dot_general(p.astype(v.dtype), v[:, sl],
                             (((1,), (0,)), ((), ())),
                             preferred_element_type=jnp.float32)     # (tq, D)
        acc_ref[h] = alpha * acc_ref[h] + pv
        m_ref[h] = m_new

    @pl.when(ki == pl.num_programs(2) - 1)
    def _finalize():
        # One (H, tq, D) -> (tq, H*D) relayout, once per q tile, then a single
        # lane-dense store of the output block.
        cols = []
        for h in range(num_heads):
            inv = pl.reciprocal(l_ref[h], approx=True)               # EUP, (tq, 1)
            cols.append((acc_ref[h] * inv).astype(o_ref.dtype))
        o_ref[0] = jnp.concatenate(cols, axis=-1)


def flash_mha(q, k, v, num_heads, n_valid):
    B, N_pad, C = q.shape
    head_dim = C // num_heads
    if N_pad >= 128:
        tq = _tile(N_pad, _TQ_T, 128)     # lane/sublane-dense, 128-aligned tiles
        tkv = _tile(N_pad, _TKV_T, 128)
    else:
        tq = tkv = N_pad                  # tiny sequences: one full block
    # v7x has 2 TensorCores sharing the parallel grid axes: make sure both get work.
    while B * (N_pad // tq) < 2 and tq > 128 and (tq // 2) % 128 == 0:
        tq //= 2
    grid = (B, N_pad // tq, N_pad // tkv)

    q_spec = pl.BlockSpec((1, tq, C), lambda b, qi, ki: (b, qi, 0))
    kv_spec = pl.BlockSpec((1, tkv, C), lambda b, qi, ki: (b, ki, 0))
    o_spec = pl.BlockSpec((1, tq, C), lambda b, qi, ki: (b, qi, 0))

    return pl.pallas_call(
        functools.partial(_flash_attn_kernel, num_heads=num_heads,
                          head_dim=head_dim, n_valid=n_valid, n_padded=N_pad),
        out_shape=jax.ShapeDtypeStruct((B, N_pad, C), q.dtype),
        grid=grid,
        in_specs=[q_spec, kv_spec, kv_spec],
        out_specs=o_spec,
        scratch_shapes=[pltpu.VMEM((num_heads, tq, head_dim), q.dtype),    # q (head-major)
                        pltpu.VMEM((num_heads, tq, 1), jnp.float32),       # m
                        pltpu.VMEM((num_heads, tq, 1), jnp.float32),       # l
                        pltpu.VMEM((num_heads, tq, head_dim), jnp.float32)],  # acc
        compiler_params=pltpu.CompilerParams(
            dimension_semantics=("parallel", "parallel", "arbitrary"),
            vmem_limit_bytes=VMEM_LIMIT),
    )(q, k, v)


# ---------------------------------------------------------------------------
# Module wrapper
# ---------------------------------------------------------------------------
class Attention:
    def __init__(self, dim, heads=12, key=None):
        assert dim % heads == 0
        self.dim = dim
        self.num_heads = heads
        self.scale = (dim // heads) ** (-0.5)
        key = jax.random.PRNGKey(0) if key is None else key
        k1, k2, k3, k4 = jax.random.split(key, 4)
        w_qkv = 0.02 * jax.random.normal(k1, (dim, 3 * dim), dtype=jnp.float32)
        b_qkv = 0.02 * jax.random.normal(k2, (1, 3 * dim), dtype=jnp.float32)
        w_proj = 0.02 * jax.random.normal(k3, (dim, dim), dtype=jnp.float32)
        b_proj = 0.02 * jax.random.normal(k4, (1, dim), dtype=jnp.float32)

        # Raw f32 parameters (PyTorch-equivalent semantics, used by reference()).
        self.w_qkv = w_qkv
        self.b_qkv = b_qkv
        self.w_proj_f32 = w_proj
        self.b_proj = b_proj

        # Kernel-side parameters: softmax scale folded into the Q projection so
        # the flash kernel never multiplies by `scale`; bf16 MXU operands.
        self.w_q = (w_qkv[:, :dim] * self.scale).astype(jnp.bfloat16)
        self.w_k = w_qkv[:, dim:2 * dim].astype(jnp.bfloat16)
        self.w_v = w_qkv[:, 2 * dim:].astype(jnp.bfloat16)
        self.b_q = b_qkv[:, :dim] * self.scale
        self.b_k = b_qkv[:, dim:2 * dim]
        self.b_v = b_qkv[:, 2 * dim:]
        self.w_proj = w_proj.astype(jnp.bfloat16)

    def __call__(self, x):
        B, N, C = x.shape
        # Pad the sequence so all flash/projection tiles stay lane/sublane-dense;
        # padded KV positions are masked in the kernel, padded rows sliced off.
        gran = 128 if N >= 128 else 16
        n_pad = _round_up(N, gran)
        if n_pad != N:
            x = jnp.pad(x, ((0, 0), (0, n_pad - N), (0, 0)))
        xb = x.reshape(B * n_pad, C).astype(jnp.bfloat16)

        # Fused QKV projection -> q (pre-scaled), k, v already separated, channels-last.
        q2d, k2d, v2d = qkv_proj(xb, self.w_q, self.w_k, self.w_v,
                                 self.b_q, self.b_k, self.b_v)
        q = q2d.reshape(B, n_pad, C)
        k = k2d.reshape(B, n_pad, C)
        v = v2d.reshape(B, n_pad, C)

        o = flash_mha(q, k, v, self.num_heads, n_valid=N)   # (B, n_pad, C) bf16

        # TODO(synk): emit the output projection in bf16 (out_dtype=jnp.bfloat16)
        # if the surrounding model tolerates it; kept f32 to match the PyTorch
        # module's output dtype.
        y = linear(o.reshape(B * n_pad, C), self.w_proj, self.b_proj,
                   out_dtype=jnp.float32)
        return y.reshape(B, n_pad, C)[:, :N, :]


# ---------------------------------------------------------------------------
# Pure-JAX reference (mirrors the PyTorch forward) for correctness check
# ---------------------------------------------------------------------------
def reference(module, x):
    B, N, C = x.shape
    H = module.num_heads
    D = C // H
    qkv = x.reshape(B * N, C) @ module.w_qkv + module.b_qkv
    qkv = qkv.reshape(B, N, 3, H, D).transpose(2, 0, 3, 1, 4)
    q, k, v = qkv[0], qkv[1], qkv[2]
    attn = jnp.einsum("bhnd,bhmd->bhnm", q, k) * module.scale
    attn = jax.nn.softmax(attn, axis=-1)
    o = jnp.einsum("bhnm,bhmd->bhnd", attn, v)
    o = o.transpose(0, 2, 1, 3).reshape(B, N, C)
    return (o @ module.w_proj_f32 + module.b_proj).reshape(B, N, C)


if __name__ == "__main__":
    # DINO ViT-small-like (small) shape: exercises padding+masking (197 -> 256),
    # lane-dense tiles (C = 384 = 3*128) and the multi-head loop (head_dim = 32).
    B, N, dim, heads = 2, 197, 384, 12
    key = jax.random.PRNGKey(0)
    kx, kp = jax.random.split(key)
    x = jax.random.normal(kx, (B, N, dim), dtype=jnp.float32)

    attn = Attention(dim, heads=heads, key=kp)
    y = jax.block_until_ready(attn(x))

    y_ref = reference(attn, x)
    assert y.shape == (B, N, dim)
    err = float(jnp.max(jnp.abs(y - y_ref)))
    assert jnp.allclose(y, y_ref, atol=2e-2, rtol=2e-2), (
        f"mismatch vs reference: max abs err {err}")
    print("KERNEL_OK")
</pallas_src>

<mosaic_0001>
module attributes {stable_mosaic.version = 11 : i64} {
  func.func @_qkv_kernel(%arg0: i32, %arg1: i32, %arg2: i32, %arg3: memref<256x384xbf16, #tpu.memory_space<vmem>>, %arg4: memref<384x128xbf16, #tpu.memory_space<vmem>>, %arg5: memref<384x128xbf16, #tpu.memory_space<vmem>>, %arg6: memref<384x128xbf16, #tpu.memory_space<vmem>>, %arg7: memref<1x128xf32, #tpu.memory_space<vmem>>, %arg8: memref<1x128xf32, #tpu.memory_space<vmem>>, %arg9: memref<1x128xf32, #tpu.memory_space<vmem>>, %arg10: memref<256x128xbf16, #tpu.memory_space<vmem>>, %arg11: memref<256x128xbf16, #tpu.memory_space<vmem>>, %arg12: memref<256x128xbf16, #tpu.memory_space<vmem>>, %arg13: memref<256x128xf32, #tpu.memory_space<vmem>>, %arg14: memref<256x128xf32, #tpu.memory_space<vmem>>, %arg15: memref<256x128xf32, #tpu.memory_space<vmem>>) attributes {dimension_semantics = [#tpu.dimension_semantics<parallel>, #tpu.dimension_semantics<parallel>, #tpu.dimension_semantics<arbitrary>], iteration_bounds = array<i64: 2, 3, 1>, scalar_prefetch = 0 : i64, scratch_operands = 3 : i64, tpu.core_type = #tpu.core_type<tc>, window_params = [{transform_indices = @transform_0, window_bounds = array<i64: 256, 384>}, {transform_indices = @transform_1, window_bounds = array<i64: 384, 128>}, {transform_indices = @transform_2, window_bounds = array<i64: 384, 128>}, {transform_indices = @transform_3, window_bounds = array<i64: 384, 128>}, {transform_indices = @transform_4, window_bounds = array<i64: 1, 128>}, {transform_indices = @transform_5, window_bounds = array<i64: 1, 128>}, {transform_indices = @transform_6, window_bounds = array<i64: 1, 128>}, {transform_indices = @transform_7, window_bounds = array<i64: 256, 128>}, {transform_indices = @transform_8, window_bounds = array<i64: 256, 128>}, {transform_indices = @transform_9, window_bounds = array<i64: 256, 128>}]} {
    %c0_i32 = arith.constant 0 : i32
    %0 = arith.cmpi eq, %arg2, %c0_i32 : i32
    %1 = arith.extui %0 : i1 to i32
    %c0_i32_0 = arith.constant 0 : i32
    %2 = arith.cmpi ne, %1, %c0_i32_0 : i32
    scf.if %2 {
      %cst_24 = arith.constant 0.000000e+00 : f32
      %22 = vector.broadcast %cst_24 : f32 to vector<256x128xf32>
      %c0_25 = arith.constant 0 : index
      %c0_26 = arith.constant 0 : index
      %23 = vector.load %arg13[%c0_25, %c0_26] : memref<256x128xf32, #tpu.memory_space<vmem>>, vector<256x128xf32>
      tpu.vector_store %arg13[%c0_25, %c0_26], %22 {strides = array<i32>} : memref<256x128xf32, #tpu.memory_space<vmem>>, vector<256x128xf32>,
      %cst_27 = arith.constant 0.000000e+00 : f32
      %24 = vector.broadcast %cst_27 : f32 to vector<256x128xf32>
      %c0_28 = arith.constant 0 : index
      %c0_29 = arith.constant 0 : index
      %25 = vector.load %arg14[%c0_28, %c0_29] : memref<256x128xf32, #tpu.memory_space<vmem>>, vector<256x128xf32>
      tpu.vector_store %arg14[%c0_28, %c0_29], %24 {strides = array<i32>} : memref<256x128xf32, #tpu.memory_space<vmem>>, vector<256x128xf32>,
      %cst_30 = arith.constant 0.000000e+00 : f32
      %26 = vector.broadcast %cst_30 : f32 to vector<256x128xf32>
      %c0_31 = arith.constant 0 : index
      %c0_32 = arith.constant 0 : index
      %27 = vector.load %arg15[%c0_31, %c0_32] : memref<256x128xf32, #tpu.memory_space<vmem>>, vector<256x128xf32>
      tpu.vector_store %arg15[%c0_31, %c0_32], %26 {strides = array<i32>} : memref<256x128xf32, #tpu.memory_space<vmem>>, vector<256x128xf32>,
    } else {
    }
    %c0 = arith.constant 0 : index
    %c0_1 = arith.constant 0 : index
    %3 = vector.load %arg3[%c0, %c0_1] : memref<256x384xbf16, #tpu.memory_space<vmem>>, vector<256x384xbf16>
    %c0_2 = arith.constant 0 : index
    %c0_3 = arith.constant 0 : index
    %4 = vector.load %arg13[%c0_2, %c0_3] : memref<256x128xf32, #tpu.memory_space<vmem>>, vector<256x128xf32>
    %c0_4 = arith.constant 0 : index
    %c0_5 = arith.constant 0 : index
    %5 = vector.load %arg4[%c0_4, %c0_5] : memref<384x128xbf16, #tpu.memory_space<vmem>>, vector<384x128xbf16>
    %cst = arith.constant dense<0.000000e+00> : vector<256x128xf32>
    %6 = tpu.matmul %3, %5, %cst {dimension_numbers = #tpu.dot_dimension_numbers<[1], [0], [0], [1], [0, 0, 1, 1], [], []>} : vector<256x384xbf16>, vector<384x128xbf16>, vector<256x128xf32> -> vector<256x128xf32>
    %7 = arith.addf %4, %6 : vector<256x128xf32>
    %c0_6 = arith.constant 0 : index
    %c0_7 = arith.constant 0 : index
    %8 = vector.load %arg13[%c0_6, %c0_7] : memref<256x128xf32, #tpu.memory_space<vmem>>, vector<256x128xf32>
    tpu.vector_store %arg13[%c0_6, %c0_7], %7 {strides = array<i32>} : memref<256x128xf32, #tpu.memory_space<vmem>>, vector<256x128xf32>,
    %c0_8 = arith.constant 0 : index
    %c0_9 = arith.constant 0 : index
    %9 = vector.load %arg14[%c0_8, %c0_9] : memref<256x128xf32, #tpu.memory_space<vmem>>, vector<256x128xf32>
    %c0_10 = arith.constant 0 : index
    %c0_11 = arith.constant 0 : index
    %10 = vector.load %arg5[%c0_10, %c0_11] : memref<384x128xbf16, #tpu.memory_space<vmem>>, vector<384x128xbf16>
    %cst_12 = arith.constant dense<0.000000e+00> : vector<256x128xf32>
    %11 = tpu.matmul %3, %10, %cst_12 {dimension_numbers = #tpu.dot_dimension_numbers<[1], [0], [0], [1], [0, 0, 1, 1], [], []>} : vector<256x384xbf16>, vector<384x128xbf16>, vector<256x128xf32> -> vector<256x128xf32>
    %12 = arith.addf %9, %11 : vector<256x128xf32>
    %c0_13 = arith.constant 0 : index
    %c0_14 = arith.constant 0 : index
    %13 = vector.load %arg14[%c0_13, %c0_14] : memref<256x128xf32, #tpu.memory_space<vmem>>, vector<256x128xf32>
    tpu.vector_store %arg14[%c0_13, %c0_14], %12 {strides = array<i32>} : memref<256x128xf32, #tpu.memory_space<vmem>>, vector<256x128xf32>,
    %c0_15 = arith.constant 0 : index
    %c0_16 = arith.constant 0 : index
    %14 = vector.load %arg15[%c0_15, %c0_16] : memref<256x128xf32, #tpu.memory_space<vmem>>, vector<256x128xf32>
    %c0_17 = arith.constant 0 : index
    %c0_18 = arith.constant 0 : index
    %15 = vector.load %arg6[%c0_17, %c0_18] : memref<384x128xbf16, #tpu.memory_space<vmem>>, vector<384x128xbf16>
    %cst_19 = arith.constant dense<0.000000e+00> : vector<256x128xf32>
    %16 = tpu.matmul %3, %15, %cst_19 {dimension_numbers = #tpu.dot_dimension_numbers<[1], [0], [0], [1], [0, 0, 1, 1], [], []>} : vector<256x384xbf16>, vector<384x128xbf16>, vector<256x128xf32> -> vector<256x128xf32>
    %17 = arith.addf %14, %16 : vector<256x128xf32>
    %c0_20 = arith.constant 0 : index
    %c0_21 = arith.constant 0 : index
    %18 = vector.load %arg15[%c0_20, %c0_21] : memref<256x128xf32, #tpu.memory_space<vmem>>, vector<256x128xf32>
    tpu.vector_store %arg15[%c0_20, %c0_21], %17 {strides = array<i32>} : memref<256x128xf32, #tpu.memory_space<vmem>>, vector<256x128xf32>,
    %c0_i32_22 = arith.constant 0 : i32
    %19 = arith.cmpi eq, %arg2, %c0_i32_22 : i32
    %20 = arith.extui %19 : i1 to i32
    %c0_i32_23 = arith.constant 0 : i32
    %21 = arith.cmpi ne, %20, %c0_i32_23 : i32
    scf.if %21 {
      %c0_24 = arith.constant 0 : index
      %c0_25 = arith.constant 0 : index
      %22 = vector.load %arg13[%c0_24, %c0_25] : memref<256x128xf32, #tpu.memory_space<vmem>>, vector<256x128xf32>
      %c0_26 = arith.constant 0 : index
      %c0_27 = arith.constant 0 : index
      %23 = vector.load %arg7[%c0_26, %c0_27] : memref<1x128xf32, #tpu.memory_space<vmem>>, vector<1x128xf32>
      %24 = vector.broadcast %23 : vector<1x128xf32> to vector<256x128xf32>
      %25 = arith.addf %22, %24 : vector<256x128xf32>
      %26 = arith.truncf %25 : vector<256x128xf32> to vector<256x128xbf16>
      %c0_28 = arith.constant 0 : index
      %c0_29 = arith.constant 0 : index
      %27 = vector.load %arg10[%c0_28, %c0_29] : memref<256x128xbf16, #tpu.memory_space<vmem>>, vector<256x128xbf16>
      tpu.vector_store %arg10[%c0_28, %c0_29], %26 {strides = array<i32>} : memref<256x128xbf16, #tpu.memory_space<vmem>>, vector<256x128xbf16>,
      %c0_30 = arith.constant 0 : index
      %c0_31 = arith.constant 0 : index
      %28 = vector.load %arg14[%c0_30, %c0_31] : memref<256x128xf32, #tpu.memory_space<vmem>>, vector<256x128xf32>
      %c0_32 = arith.constant 0 : index
      %c0_33 = arith.constant 0 : index
      %29 = vector.load %arg8[%c0_32, %c0_33] : memref<1x128xf32, #tpu.memory_space<vmem>>, vector<1x128xf32>
      %30 = vector.broadcast %29 : vector<1x128xf32> to vector<256x128xf32>
      %31 = arith.addf %28, %30 : vector<256x128xf32>
      %32 = arith.truncf %31 : vector<256x128xf32> to vector<256x128xbf16>
      %c0_34 = arith.constant 0 : index
      %c0_35 = arith.constant 0 : index
      %33 = vector.load %arg11[%c0_34, %c0_35] : memref<256x128xbf16, #tpu.memory_space<vmem>>, vector<256x128xbf16>
      tpu.vector_store %arg11[%c0_34, %c0_35], %32 {strides = array<i32>} : memref<256x128xbf16, #tpu.memory_space<vmem>>, vector<256x128xbf16>,
      %c0_36 = arith.constant 0 : index
      %c0_37 = arith.constant 0 : index
      %34 = vector.load %arg15[%c0_36, %c0_37] : memref<256x128xf32, #tpu.memory_space<vmem>>, vector<256x128xf32>
      %c0_38 = arith.constant 0 : index
      %c0_39 = arith.constant 0 : index
      %35 = vector.load %arg9[%c0_38, %c0_39] : memref<1x128xf32, #tpu.memory_space<vmem>>, vector<1x128xf32>
      %36 = vector.broadcast %35 : vector<1x128xf32> to vector<256x128xf32>
      %37 = arith.addf %34, %36 : vector<256x128xf32>
      %38 = arith.truncf %37 : vector<256x128xf32> to vector<256x128xbf16>
      %c0_40 = arith.constant 0 : index
      %c0_41 = arith.constant 0 : index
      %39 = vector.load %arg12[%c0_40, %c0_41] : memref<256x128xbf16, #tpu.memory_space<vmem>>, vector<256x128xbf16>
      tpu.vector_store %arg12[%c0_40, %c0_41], %38 {strides = array<i32>} : memref<256x128xbf16, #tpu.memory_space<vmem>>, vector<256x128xbf16>,
    } else {
    }
    return
  }
  func.func @transform_0(%arg0: i32, %arg1: i32, %arg2: i32) -> (i32, i32) {
    %c0_i32 = arith.constant 0 : i32
    return %arg0, %arg2 : i32, i32
  }
  func.func @transform_1(%arg0: i32, %arg1: i32, %arg2: i32) -> (i32, i32) {
    %c0_i32 = arith.constant 0 : i32
    return %arg2, %arg1 : i32, i32
  }
  func.func @transform_2(%arg0: i32, %arg1: i32, %arg2: i32) -> (i32, i32) {
    %c0_i32 = arith.constant 0 : i32
    return %arg2, %arg1 : i32, i32
  }
  func.func @transform_3(%arg0: i32, %arg1: i32, %arg2: i32) -> (i32, i32) {
    %c0_i32 = arith.constant 0 : i32
    return %arg2, %arg1 : i32, i32
  }
  func.func @transform_4(%arg0: i32, %arg1: i32, %arg2: i32) -> (i32, i32) {
    %c0_i32 = arith.constant 0 : i32
    %c0_i32_0 = arith.constant 0 : i32
    return %c0_i32, %arg1 : i32, i32
  }
  func.func @transform_5(%arg0: i32, %arg1: i32, %arg2: i32) -> (i32, i32) {
    %c0_i32 = arith.constant 0 : i32
    %c0_i32_0 = arith.constant 0 : i32
    return %c0_i32, %arg1 : i32, i32
  }
  func.func @transform_6(%arg0: i32, %arg1: i32, %arg2: i32) -> (i32, i32) {
    %c0_i32 = arith.constant 0 : i32
    %c0_i32_0 = arith.constant 0 : i32
    return %c0_i32, %arg1 : i32, i32
  }
  func.func @transform_7(%arg0: i32, %arg1: i32, %arg2: i32) -> (i32, i32) {
    %c0_i32 = arith.constant 0 : i32
    return %arg0, %arg1 : i32, i32
  }
  func.func @transform_8(%arg0: i32, %arg1: i32, %arg2: i32) -> (i32, i32) {
    %c0_i32 = arith.constant 0 : i32
    return %arg0, %arg1 : i32, i32
  }
  func.func @transform_9(%arg0: i32, %arg1: i32, %arg2: i32) -> (i32, i32) {
    %c0_i32 = arith.constant 0 : i32
    return %arg0, %arg1 : i32, i32
  }
}

</mosaic_0001>

<bundles_post_ra>
// kernel: tpu_custom_call.1
= control target key start
LH: loop header
LB: loop body
LE: loop exit
PB: predicated region body
PF: predicated region fallthrough
CT: control target
= control target key end

     0   :  { %s6198_s0 = inlined_call_operand.hbm [shape: bf16[512,384], index: 0, kind: input, shape index: {}]   ;;  %s6199_s1 = inlined_call_operand.hbm [shape: bf16[384,384], index: 1, kind: input, shape index: {}]   ;;  %s6200_s2 = inlined_call_operand.hbm [shape: bf16[384,384], index: 2, kind: input, shape index: {}]   ;;  %s6201_s3 = inlined_call_operand.hbm [shape: bf16[384,384], index: 3, kind: input, shape index: {}]   ;;  %s6202_s4 = inlined_call_operand.vmem [shape: f32[1,384], index: 4, kind: input, shape index: {}]   ;;  %s6203_s5 = inlined_call_operand.hbm [shape: f32[1,384], index: 5, kind: input, shape index: {}]   ;;  %s6204_s6 = inlined_call_operand.hbm [shape: f32[1,384], index: 6, kind: input, shape index: {}]   ;;  %s6205_s7 = inlined_call_operand.hbm [shape: bf16[512,384], index: 7, kind: output, shape index: {0}]   ;;  %s6206_s8 = inlined_call_operand.hbm [shape: bf16[512,384], index: 8, kind: output, shape index: {1}]   ;;  %s6207_s9 = inlined_call_operand.hbm [shape: bf16[512,384], index: 9, kind: output, shape index: {2}]  }
   0x1   :  { %6259 = sst [smem:[#allocation76_spill]] %s6198_s0 }
   0x2   :  { %6260 = sst [smem:[#allocation77_spill]] %s6199_s1 }
   0x3   :  { %6261 = sst [smem:[#allocation78_spill]] %s6200_s2 }
   0x4   :  { %6262 = sst [smem:[#allocation79_spill]] %s6201_s3 }
   0x5   :  { %6263 = sst [smem:[#allocation80_spill]] %s6202_s4 }
   0x6   :  { %6264 = sst [smem:[#allocation81_spill]] %s6203_s5 }
   0x7   :  { %6265 = sst [smem:[#allocation82_spill]] %s6204_s6 }
   0x8   :  { %6266 = sst [smem:[#allocation83_spill]] %s6205_s7 }
   0x9   :  { %6267 = sst [smem:[#allocation84_spill]] %s6206_s8 }
   0xa   :  { %6268 = sst [smem:[#allocation85_spill]] %s6207_s9 }
   0xb   :  { %15 = vsyncpa [#allocation6], 0 }
   0xc   :  { %17 = vsyncpa [#allocation6 + $0x1], 0 }
   0xd   :  { %18 = vsyncpa [#allocation9], 0 }
   0xe   :  { %20 = vsyncpa [#allocation9 + $0x1], 0 }
   0xf   :  { %21 = vsyncpa [#allocation12], 0 }
  0x10   :  { %23 = vsyncpa [#allocation12 + $0x1], 0 }
  0x11   :  { %24 = vsyncpa [#allocation15], 0 }
  0x12   :  { %26 = vsyncpa [#allocation15 + $0x1], 0 }
  0x13   :  { %27 = vsyncpa [#allocation7], 0 }
  0x14   :  { %29 = vsyncpa [#allocation7 + $0x1], 0 }
  0x15   :  { %30 = vsyncpa [#allocation18], 0 }
  0x16   :  { %32 = vsyncpa [#allocation18 + $0x1], 0  ;;  %s5025_s30 = smov 0   ;;  %s5027_s10 = smov 0  }
  0x17   :  { %s5029_s11 = smov 0   ;;  %s5031_s12 = smov 0  }
  0x18   :  { %s5033_s13 = smov 0   ;;  %s5035_s14 = smov 0  }
  0x19   :  { %s5037_s15 = smov 0   ;;  %s5039_s16 = smov 0  }
  0x1a   :  { %s5041_s17 = smov 0   ;;  %s5043_s18 = smov 0  }
  0x1b   :  { %s5045_s19 = smov 0   ;;  %s5047_s20 = smov 0  }
  0x1c   :  { %s5049_s21 = smov 0   ;;  %s5051_s22 = smov 0  }
  0x1d LB: > { %6269 = sst [smem:[#allocation26_spill]] %s4914_s30  ;;  %p74_p0 = scmp.eq.s32.totalorder %s4966_s22, 0  ;;  %s4966_s22 = sphi %s5051_s22, %s38_s22   ;;  %s4962_s21 = sphi %s5049_s21, %s6404_s21   ;;  %s4958_s20 = sphi %s5047_s20, %s6403_s20   ;;  %s4954_s19 = sphi %s5045_s19, %s6394_s19   ;;  %s4950_s18 = sphi %s5043_s18, %s6402_s18   ;;  %s4946_s17 = sphi %s5041_s17, %s6393_s17   ;;  %s4942_s16 = sphi %s5039_s16, %s6392_s16   ;;  %s4938_s15 = sphi %s5037_s15, %s6401_s15   ;;  %s4934_s14 = sphi %s5035_s14, %s6390_s14   ;;  %s4930_s13 = sphi %s5033_s13, %s6400_s13   ;;  %s4926_s12 = sphi %s5031_s12, %s6399_s12   ;;  %s4922_s11 = sphi %s5029_s11, %s6388_s11   ;;  %s4918_s10 = sphi %s5027_s10, %s6398_s10   ;;  %s4914_s30 = sphi %s5025_s30, %s6397_s30  }
  0x1e   : > { %6270 = sst [smem:[#allocation27_spill]] %s4922_s11  ;;  %p101_p1 = scmp.ne.s32.totalorder %s4934_s14, %s4930_s13 }
  0x1f   : > { %6271 = sst [smem:[#allocation28_spill]] %s4934_s14  ;;  %p6221_p2 = scmp.lt.s32.totalorder %s4966_s22, 6 }
  0x20   : > { %6272 = sst [smem:[#allocation29_spill]] %s4942_s16  ;;  %p103_p3 = por %p101_p1, %p74_p0 }
  0x21   : > { %6273 = sst [smem:[#allocation30_spill]] %s4946_s17  ;;  %s374_s23 = sand.u32 1, %s4966_s22  }
  0x22   : > { %6274 = sst [smem:[#allocation31_spill]] %s4950_s18  ;;  %s5103_s24 = sand.u32 1, %s4934_s14  }
  0x23   : > { %6275 = sst [smem:[#allocation32_spill]] %s4954_s19  ;;  %s5106_s25 = smul.u32 192, %s5103_s24 }
  0x24   : > { %6276 = sst [smem:[#allocation33_spill]] %s4962_s21  ;;  %s5109_s26 = sshll.u32 %s4958_s20, 2 }
  0x25   : > { %p5113_p4 = pnand %p6221_p2, %p103_p3  ;;  %s6278_s1 = sld [smem:[#allocation77_spill]] }
  0x26   : > { %s378_s7 = scalar_lea.vmem [#allocation8], %s5106_s25  ;;  %p3460_p5 = scmp.ge.s32.totalorder %s4966_s22, 1 }
  0x27   : > { %s388_s19 = sshll.u32 %s378_s7, 4  ;;  %s5123_s4 = scalar_lea.sflag [#allocation9], %s374_s23  ;;  %s389_s19 = int_to_ptr.vmem [resolvable:$true] %s388_s19 }
  0x28   : > { %s6215_s18 = smov 192   ;;  %s6213_s6 = smov 64  }
  0x29   : > { %s6214_s5 = smov 4   ;;  %p484_p6 = scmp.lt.s32.totalorder %s4966_s22, 7 }
  0x2a   : > { %s6279_s3 = sld [smem:[#allocation79_spill]]  ;;  %s426_s2 = scalar_lea.vmem [#allocation11], %s5106_s25 }
  0x2b   : > { %s385_s9 = scalar_lea.hbm %s6278_s1, %s5109_s26  ;;  %p5136_p7 = pnand %p3460_p5, %p484_p6 }
  0x2c   : > { %s386_s8 = sshll.u32 %s385_s9, 4  ;;  %s5150_s7 = sadd.s32 4294967295, %s4966_s22   ;;  %s387_s8 = int_to_ptr.hbm [resolvable:$true] %s386_s8 }
  0x2d   : > { %4421 = dma.hbm_to_vmem [thread:$0]  (!%p5113_p4), %s387_s8, 3072, %s389_s19, %s5123_s4, %s6215_s18, %s6213_s6, %s6214_s5  }
  0x2e   : > { %s436_s8 = sshll.u32 %s426_s2, 4  ;;  %s5141_s19 = scalar_lea.sflag [#allocation12], %s374_s23  ;;  %s437_s8 = int_to_ptr.vmem [resolvable:$true] %s436_s8 }
  0x2f   : > { %s57_s2 = sadd.s32 1, %s4962_s21  ;;  %p73_p9 = scmp.ne.s32.totalorder %s4946_s17, %s4942_s16 }
  0x30   : > { %s433_s28 = scalar_lea.hbm %s6279_s3, %s5109_s26  ;;  %s66_s3 = sadd.s32 1, %s4946_s17 }
  0x31   : > { %s434_s1 = sshll.u32 %s433_s28, 4  ;;  %s53_s28 = sadd.s32 1, %s4958_s20  ;;  %s435_s1 = int_to_ptr.hbm [resolvable:$true] %s434_s1 }
  0x32   : > { %4427 = dma.hbm_to_vmem [thread:$0]  (!%p5113_p4), %s435_s1, 3072, %s437_s8, %s5141_s19, %s6215_s18, %s6213_s6, %s6214_s5  }
  0x33   : > { %p55_p8 = scmp.ge.s32.totalorder %s53_s28, 3  ;;  %p5163_p10 = por %p74_p0, %p73_p9 }
  0x34   : > { %p79_p11 = scmp.ne.s32.totalorder %s4942_s16, %s4938_s15  ;;  %p80_p13 = scmp.eq.s32.totalorder %s5150_s7, 0 }
  0x35   : > { %s6406_s28 = smov (%p55_p8, %s53_s28), 0  ;;  %s6408_s2 = smov (!%p55_p8, %s57_s2), %s4962_s21 }
  0x36   : > { %6281 = sst [smem:[#allocation34_spill]] %s6406_s28  ;;  %p59_p12 = scmp.ge.s32.totalorder %s6408_s2, 2 }
  0x37   : > { %s90_s23 = ssub.s32 %s4958_s20, %s6406_s28  ;;  %s94_s8 = sadd.s32 1, %s4934_s14 }
  0x38   : > { %s6410_s2 = smov (%p59_p12, %s6408_s2), 0  ;;  %p5175_p0 = por %p80_p13, %p79_p11 }
  0x39   : > { %6283 = sst [smem:[#allocation35_spill]] %s6410_s2  ;;  %p92_p1 = scmp.eq.s32.totalorder %s90_s23, 0 }
  0x3a   : > { %s6284_s6 = scalar_select %p5175_p0, 1, 0 }
  0x3b   : > { %s61_s15 = ssub.s32 %s4962_s21, %s6410_s2  ;;  %p107_p3 = scmp.ne.s32.totalorder %s4930_s13, %s4926_s12 }
  0x3c   : > { %6285 = sst [smem:[#allocation36_spill]] %s6284_s6  ;;  %p64_p5 = scmp.eq.s32.totalorder %s61_s15, 0 }
  0x3d   : > { %s253_s5 = sor.u32 %s90_s23, %s61_s15  ;;  %p5189_p6 = por %p107_p3, %p80_p13 }
  0x3e   : > { %s5184_s18 = scalar_select %p92_p1, %s4934_s14, %s94_s8  }
  0x3f   : > { %s5187_s9 = scalar_select %p64_p5, %s4946_s17, %s66_s3  }
  0x40   : > { %6286 = sst [smem:[#allocation37_spill]] %s5184_s18  ;;  %p254_p8 = scmp.eq.s32.totalorder %s253_s5, 0 }
  0x41   : > { %6287 = sst [smem:[#allocation38_spill]] %s5187_s9  ;;  %s256_s16 = sadd.s32 1, %s4922_s11 }
  0x42   : > { %p266_p9 = scmp.ne.s32.totalorder %s4922_s11, %s4918_s10  ;;  %p267_p11 = scmp.eq.s32.totalorder %s5150_s7, 5 }
  0x43   : > { %s5197_s6 = scalar_select %p254_p8, %s4922_s11, %s256_s16  }
  0x44   : > { %p272_p12 = scmp.ne.s32.totalorder %s4918_s10, %s4914_s30  ;;  %s6290_s12 = sadd.s32 4294967294, %s4966_s22  }
  0x45   : > { %6289 = sst [smem:[#allocation39_spill]] %s5197_s6  ;;  %p273_p2 = scmp.eq.s32.totalorder %s6290_s12, 5 }
  0x46   : > { %s349_s23 = sand.u32 1, %s4946_s17   ;;  %p5205_p0 = por %p267_p11, %p266_p9 }
  0x47   : > { %p5209_p13 = por %p273_p2, %p272_p12  ;;  %s4387_s5 = smul.u32 384, %s349_s23 }
  0x48   : > { %s4388_s15 = smul.u32 384, %s4962_s21  ;;  %p6294_p1 = scmp.lt.s32.totalorder %s4966_s22, 6 }
  0x49   : > { %s6292_s3 = scalar_select %p5209_p13, 1, 0 }
  0x4a   : > { %p4416_p3 = pnand %p6294_p1, %p5163_p10  ;;  %s6295_s0 = sld [smem:[#allocation76_spill]] }
  0x4b   : > { %6293 = sst [smem:[#allocation40_spill]] %s6292_s3  ;;  %s353_s9 = scalar_lea.vmem [#allocation5], %s4387_s5 }
  0x4c   : > { %s364_s17 = sshll.u32 %s353_s9, 4  ;;  %s350_s14 = scalar_lea.sflag [#allocation6], %s349_s23  ;;  %s365_s17 = int_to_ptr.vmem [resolvable:$true] %s364_s17 }
  0x4d   : > { %s4971_s21 = smov 12   ;;  %s6296_s1 = smov 192  }
  0x4e   : > { %s6297_s16 = sld [smem:[#allocation78_spill]]  ;;  %s402_s5 = scalar_lea.vmem [#allocation10], %s5106_s25 }
  0x4f   : > { %s412_s9 = sshll.u32 %s402_s5, 4  ;;  %s6298_s23 = smov 4   ;;  %s413_s9 = int_to_ptr.vmem [resolvable:$true] %s412_s9 }
  0x50   : > { %s361_s12 = scalar_lea.hbm %s6295_s0, %s4388_s15  ;;  %s455_s6 = scalar_lea.vmem [#allocation13], %s5103_s24 }
  0x51   : > { %s362_s18 = sshll.u32 %s361_s12, 4  ;;  %s6299_s12 = smov 64   ;;  %s363_s18 = int_to_ptr.hbm [resolvable:$true] %s362_s18 }
  0x52   : > { %4418 = dma.hbm_to_vmem [thread:$0]  (!%p4416_p3), %s363_s18, 6144, %s365_s17, %s350_s14, %s6296_s1, %s6296_s1, %s4971_s21  }
  0x53   : > { %s6300_s14 = sld [smem:[#allocation81_spill]]  ;;  %s462_s21 = sshll.u32 %s455_s6, 4  ;;  %s463_s21 = int_to_ptr.vmem [resolvable:$true] %s462_s21 }
  0x54   : > { %s409_s15 = scalar_lea.hbm %s6297_s16, %s5109_s26  ;;  %s6301_s2 = sld [smem:[#allocation82_spill]] }
  0x55   : > { %s410_s0 = sshll.u32 %s409_s15, 4  ;;  %s472_s15 = scalar_lea.vmem [#allocation14], %s5103_s24  ;;  %s411_s0 = int_to_ptr.hbm [resolvable:$true] %s410_s0 }
  0x56   : > { %4424 = dma.hbm_to_vmem [thread:$0]  (!%p5113_p4), %s411_s0, 3072, %s413_s9, %s5123_s4, %s6296_s1, %s6299_s12, %s6298_s23  }
  0x57   : > { %s479_s5 = sshll.u32 %s472_s15, 4  ;;  %s470_s0 = scalar_lea.sflag [#allocation15], %s5103_s24  ;;  %s480_s5 = int_to_ptr.vmem [resolvable:$true] %s479_s5 }
  0x59   : > { %s458_s17 = scalar_lea.hbm %s6300_s14, %s4958_s20  ;;  %488 = sbr.rel (%p5136_p7) target bundleno = 870 (0x366), region = 48 }
  0x5a   : > { %s460_s18 = sshll.u32 %s458_s17, 4  ;;  %s475_s16 = scalar_lea.hbm %s6301_s2, %s4958_s20  ;;  %s461_s18 = int_to_ptr.hbm [resolvable:$true] %s460_s18 }
  0x5b   : > { %4430 = dma.hbm_to_vmem [thread:$0]  (!%p5113_p4), %s461_s18, 16, %s463_s21, %s5141_s19  }
  0x5c   : > { %s477_s30 = sshll.u32 %s475_s16, 4  ;;  %s478_s30 = int_to_ptr.hbm [resolvable:$true] %s477_s30 }
  0x5d   : > { %4433 = dma.hbm_to_vmem [thread:$0]  (!%p5113_p4), %s478_s30, 16, %s480_s5, %s470_s0  }
  0x5e   : > { %s6302_s4 = sld [smem:[#allocation29_spill]] }
  0x5f   : > { %s6303_s11 = sld [smem:[#allocation36_spill]] }
  0x64   : > { %s490_s3 = sand.u32 1, %s6302_s4  }
  0x65   : > { %s4392_s1 = smul.u32 384, %s490_s3  ;;  %s491_s19 = scalar_lea.sflag [#allocation6], %s490_s3 }
  0x66   : > { %p6304_p2 = scmp.ne.s32.totalorder %s6303_s11, 0 }
  0x67   : > { %s5253_s9 = scalar_lea.vmem [#allocation5], %s4392_s1 }
  0x68   : > { %4889 = dma.done.wait (%p6304_p2), %s491_s19, 6144  }
  0x69   : > { %4891 = vsyncadd (%p6304_p2), %s491_s19, 4294961152  ;;  %s5260_s24 = sand.u32 1, %s5150_s7   ;;  %s5263_s30 = sand.u32 1, %s4930_s13  }
  0x6a   : > { %s4393_s27 = smul.u32 192, %s5263_s30  ;;  %s501_s29 = scalar_lea.sflag [#allocation9], %s5260_s24 }
  0x6c   : > { %s5267_s23 = scalar_lea.vmem [#allocation8], %s4393_s27 }
  0x6d   : > { %4893 = dma.done.wait (%p5189_p6), %s501_s29, 6144  }
  0x6e   : > { %4895 = vsyncadd (%p5189_p6), %s501_s29, 4294961152  ;;  %s5273_s12 = scalar_lea.vmem [#allocation10], %s4393_s27  ;;  %s521_s14 = scalar_lea.sflag [#allocation12], %s5260_s24 }
  0x6f   : > { %s5276_s7 = scalar_lea.vmem [#allocation11], %s4393_s27 }
  0x70   : > { %4897 = dma.done.wait (%p5189_p6), %s521_s14, 3088  }
  0x71   : > { %4899 = vsyncadd (%p5189_p6), %s521_s14, 4294964208  ;;  %s533_s17 = scalar_lea.vmem [#allocation13], %s5263_s30  ;;  %s540_s18 = scalar_lea.sflag [#allocation15], %s5263_s30 }
  0x72   : > { %s542_s6 = scalar_lea.vmem [#allocation14], %s5263_s30 }
  0x73   : > { %4901 = dma.done.wait (%p5189_p6), %s540_s18, 16  }
  0x74   : > { %4903 = vsyncadd (%p5189_p6), %s540_s18, 4294967280  ;;  %v4013_v0 = vld [vmem:[%s5267_s23 + $0x38] sm:$0xff]  ;;  %v4012_v1 = vld [vmem:[%s5267_s23 + $0x30] sm:$0xff]  ;;  %s6311_s28 = sld [smem:[#allocation31_spill]]  ;;  %s597_s15 = sand.u32 1, %s4918_s10  }
  0x75   : > { %1269 = vmatpush.bf16.msra.mxu0 %v4013_v0  ;;  %4363 = vmatpush.bf16.msra.mxu1 %v4013_v0  ;;  %v4011_v2 = vld [vmem:[%s5267_s23 + $0x28] sm:$0xff]  ;;  %v4010_v3 = vld [vmem:[%s5267_s23 + $0x20] sm:$0xff]  ;;  %v4009_v4 = vld [vmem:[%s5267_s23 + $0x18] sm:$0xff]  ;;  %s6313_s2 = sld [smem:[#allocation80_spill]]  ;;  %s5633_s4 = sshll.u32 %s597_s15, 7 }
  0x76   : > { %4364 = vmatpush.bf16.msra.mxu2 %v4013_v0  ;;  %4365 = vmatpush.bf16.msra.mxu3 %v4013_v0  ;;  %v4008_v5 = vld [vmem:[%s5267_s23 + $0x10] sm:$0xff]  ;;  %v4007_v6 = vld [vmem:[%s5267_s23 + $0x8] sm:$0xff]  ;;  %v4006_v7 = vld [vmem:[%s5267_s23] sm:$0xff]  ;;  %s5646_s11 = scalar_lea.vmem [#allocation16], %s5633_s4  ;;  %s5909_s3 = scalar_lea.vmem [#allocation17], %s5633_s4 }
  0x77   : > { %v3466_v8 = vld [vmem:[%s5253_s9] sm:$0xf]  ;;  %v3959_v9 = vld [vmem:[%s5253_s9 + $0x8] sm:$0xf0]  ;;  %v4029_v16 = vld [vmem:[%s5267_s23 + $0xb8] sm:$0xff]  ;;  %s5924_s1 = scalar_lea.vmem [#allocation19], %s5633_s4 }
  0x78   : > { %v3514_v10 = vld [vmem:[%s5253_s9 + $0x60] sm:$0xf]  ;;  %v3971_v11 = vld [vmem:[%s5253_s9 + $0x68] sm:$0xf0]  ;;  %v4037_v17 = vld [vmem:[%s5273_s12 + $0x38] sm:$0xff]  ;;  %v5307_v18 = vor.u32 %v3959_v9, %v3466_v8  ;;  %s6377_s19 = sld [smem:[#allocation32_spill]] }
  0x79   : > { %1270 = vmatpush.bf16.msra.mxu0 %v4012_v1  ;;  %4366 = vmatpush.bf16.msra.mxu1 %v4012_v1  ;;  %v3562_v12 = vld [vmem:[%s5253_s9 + $0xc0] sm:$0xf]  ;;  %v3983_v13 = vld [vmem:[%s5253_s9 + $0xc8] sm:$0xf0]  ;;  %v5309_v19 = vor.u32 %v3971_v11, %v3514_v10  ;;  %v4021_v22 = vld [vmem:[%s5267_s23 + $0x78] sm:$0xff] }
  0x7a   : > { %4367 = vmatpush.bf16.msra.mxu2 %v4012_v1  ;;  %4368 = vmatpush.bf16.msra.mxu3 %v4012_v1  ;;  %v3610_v14 = vld [vmem:[%s5253_s9 + $0x120] sm:$0xf]  ;;  %v3995_v15 = vld [vmem:[%s5253_s9 + $0x128] sm:$0xf0]  ;;  %v5311_v20 = vor.u32 %v3983_v13, %v3562_v12  ;;  %v4045_v23 = vld [vmem:[%s5273_s12 + $0x78] sm:$0xff]  ;;  %p619_p4 = scmp.lt.s32.totalorder %s6311_s28, 2 }
  0x7b   : > { %v5313_v21 = vor.u32 %v3995_v15, %v3610_v14  ;;  %v4028_v24 = vld [vmem:[%s5267_s23 + $0xb0] sm:$0xff]  ;;  %v4027_v28 = vld [vmem:[%s5267_s23 + $0xa8] sm:$0xff]  ;;  %v3478_v32 = vld [vmem:[%s5253_s9 + $0x18] sm:$0xf] }
  0x7c   : > { %6305 = vst [vmem:[#allocation41_spill] sm:$0xff] %v5311_v20  ;;  %v4036_v25 = vld [vmem:[%s5273_s12 + $0x30] sm:$0xff]  ;;  %v4035_v29 = vld [vmem:[%s5273_s12 + $0x28] sm:$0xff]  ;;  %v4026_v33 = vld [vmem:[%s5267_s23 + $0xa0] sm:$0xff]  ;;  %s5431_s21 = scalar_select %p619_p4, %s6311_s28, 2 }
  0x7d   : > { %1271 = vmatpush.bf16.msra.mxu0 %v4011_v2  ;;  %4369 = vmatpush.bf16.msra.mxu1 %v4011_v2  ;;  %6306 = vst [vmem:[#allocation42_spill] sm:$0xff] %v5313_v21  ;;  %v4020_v26 = vld [vmem:[%s5267_s23 + $0x70] sm:$0xff]  ;;  %v4019_v30 = vld [vmem:[%s5267_s23 + $0x68] sm:$0xff]  ;;  %v4034_v34 = vld [vmem:[%s5273_s12 + $0x20] sm:$0xff] }
  0x7e   : > { %4370 = vmatpush.bf16.msra.mxu2 %v4011_v2  ;;  %4371 = vmatpush.bf16.msra.mxu3 %v4011_v2  ;;  %v4044_v27 = vld [vmem:[%s5273_s12 + $0x70] sm:$0xff]  ;;  %v4043_v31 = vld [vmem:[%s5273_s12 + $0x68] sm:$0xff]  ;;  %v3962_v35 = vld [vmem:[%s5253_s9 + $0x20] sm:$0xf0]  ;;  %s621_s16 = scalar_lea.vmem %s6313_s2, %s5431_s21 }
  0x7f   : > { %v3526_v36 = vld [vmem:[%s5253_s9 + $0x78] sm:$0xf]  ;;  %v3974_v37 = vld [vmem:[%s5253_s9 + $0x80] sm:$0xf0]  ;;  %v5343_v46 = vor.u32 %v3962_v35, %v3478_v32  ;;  %v4024_v52 = vld [vmem:[%s5267_s23 + $0x90] sm:$0xff] }
  0x80   : > { %v3574_v38 = vld [vmem:[%s5253_s9 + $0xd8] sm:$0xf]  ;;  %v3986_v39 = vld [vmem:[%s5253_s9 + $0xe0] sm:$0xf0]  ;;  %v5345_v47 = vor.u32 %v3974_v37, %v3526_v36  ;;  %v4032_v53 = vld [vmem:[%s5273_s12 + $0x10] sm:$0xff] }
  0x81   : > { %1272 = vmatpush.bf16.msra.mxu0 %v4010_v3  ;;  %4372 = vmatpush.bf16.msra.mxu1 %v4010_v3  ;;  %v3622_v40 = vld [vmem:[%s5253_s9 + $0x138] sm:$0xf]  ;;  %v3998_v41 = vld [vmem:[%s5253_s9 + $0x140] sm:$0xf0]  ;;  %v5347_v48 = vor.u32 %v3986_v39, %v3574_v38  ;;  %v4016_v54 = vld [vmem:[%s5267_s23 + $0x50] sm:$0xff] }
  0x82   : > { %4373 = vmatpush.bf16.msra.mxu2 %v4010_v3  ;;  %4374 = vmatpush.bf16.msra.mxu3 %v4010_v3  ;;  %v4018_v42 = vld [vmem:[%s5267_s23 + $0x60] sm:$0xff]  ;;  %v4025_v44 = vld [vmem:[%s5267_s23 + $0x98] sm:$0xff]  ;;  %6307 = vst [vmem:[#allocation43_spill] sm:$0xff] %v5345_v47  ;;  %v5349_v49 = vor.u32 %v3998_v41, %v3622_v40  ;;  %v4040_v55 = vld [vmem:[%s5273_s12 + $0x50] sm:$0xff] }
  0x83   : > { %v4042_v43 = vld [vmem:[%s5273_s12 + $0x60] sm:$0xff]  ;;  %v4033_v45 = vld [vmem:[%s5273_s12 + $0x18] sm:$0xff]  ;;  %6308 = vst [vmem:[#allocation44_spill] sm:$0xff] %v5347_v48  ;;  %v4023_v56 = vld [vmem:[%s5267_s23 + $0x88] sm:$0xff] }
  0x84   : > { %v4017_v50 = vld [vmem:[%s5267_s23 + $0x58] sm:$0xff]  ;;  %v4031_v57 = vld [vmem:[%s5273_s12 + $0x8] sm:$0xff]  ;;  %v3490_v60 = vld [vmem:[%s5253_s9 + $0x30] sm:$0xf] }
  0x85   : > { %1273 = vmatpush.bf16.msra.mxu0 %v4009_v4  ;;  %4375 = vmatpush.bf16.msra.mxu1 %v4009_v4  ;;  %v4041_v51 = vld [vmem:[%s5273_s12 + $0x58] sm:$0xff]  ;;  %v4015_v58 = vld [vmem:[%s5267_s23 + $0x48] sm:$0xff]  ;;  %v4022_v61 = vld [vmem:[%s5267_s23 + $0x80] sm:$0xff] }
  0x86   : > { %4376 = vmatpush.bf16.msra.mxu2 %v4009_v4  ;;  %4377 = vmatpush.bf16.msra.mxu3 %v4009_v4  ;;  %v4039_v59 = vld [vmem:[%s5273_s12 + $0x48] sm:$0xff]  ;;  %v4030_v62 = vld [vmem:[%s5273_s12] sm:$0xff]  ;;  %v3965_v63 = vld [vmem:[%s5253_s9 + $0x38] sm:$0xf0] }
  0x87   : > { %v3538_v0 = vld [vmem:[%s5253_s9 + $0x90] sm:$0xf]  ;;  %v3977_v1 = vld [vmem:[%s5253_s9 + $0x98] sm:$0xf0]  ;;  %v5377_v8 = vor.u32 %v3965_v63, %v3490_v60  ;;  %v3958_v32 = vld [vmem:[%s5253_s9 + $0x4] sm:$0xf] }
  0x88   : > { %v3586_v2 = vld [vmem:[%s5253_s9 + $0xf0] sm:$0xf]  ;;  %v3989_v3 = vld [vmem:[%s5253_s9 + $0xf8] sm:$0xf0]  ;;  %v5379_v9 = vor.u32 %v3977_v1, %v3538_v0  ;;  %v3960_v35 = vld [vmem:[%s5253_s9 + $0x10] sm:$0xf0] }
  0x89   : > { %1274 = vmatpush.bf16.msra.mxu0 %v4008_v5  ;;  %4378 = vmatpush.bf16.msra.mxu1 %v4008_v5  ;;  %v3634_v4 = vld [vmem:[%s5253_s9 + $0x150] sm:$0xf]  ;;  %v5381_v10 = vor.u32 %v3989_v3, %v3586_v2  ;;  %v4061_v12 = vld [vmem:[%s5276_s7 + $0x38] sm:$0xff]  ;;  %v4051_v60 = vld [vmem:[%s5273_s12 + $0xa8] sm:$0xff] }
  0x8a   : > { %4379 = vmatpush.bf16.msra.mxu2 %v4008_v5  ;;  %4380 = vmatpush.bf16.msra.mxu3 %v4008_v5  ;;  %v4001_v5 = vld [vmem:[%s5253_s9 + $0x158] sm:$0xf0]  ;;  %6309 = vst [vmem:[#allocation45_spill] sm:$0xff] %v5379_v9  ;;  %v4060_v38 = vld [vmem:[%s5276_s7 + $0x30] sm:$0xff]  ;;  %v3504_v63 = vld [vmem:[%s5253_s9 + $0x54] sm:$0xf0] }
  0x8b   : > { %6310 = vst [vmem:[#allocation46_spill] sm:$0xff] %v5381_v10  ;;  %v5383_v11 = vor.u32 %v4001_v5, %v3634_v4  ;;  %v4069_v13 = vld [vmem:[%s5276_s7 + $0x78] sm:$0xff]  ;;  %v4068_v39 = vld [vmem:[%s5276_s7 + $0x70] sm:$0xff]  ;;  %v3970_v4 = vld [vmem:[%s5253_s9 + $0x64] sm:$0xf] }
  0x8c   : > { %v4053_v14 = vld [vmem:[%s5273_s12 + $0xb8] sm:$0xff]  ;;  %v4052_v40 = vld [vmem:[%s5273_s12 + $0xb0] sm:$0xff] }
  0x8d   : > { %1275 = vmatpush.bf16.msra.mxu0 %v4007_v6  ;;  %4381 = vmatpush.bf16.msra.mxu1 %v4007_v6  ;;  %v4077_v15 = vld [vmem:[%s5276_s7 + $0xb8] sm:$0xff]  ;;  %v4076_v41 = vld [vmem:[%s5276_s7 + $0xb0] sm:$0xff] }
  0x8e   : > { %4382 = vmatpush.bf16.msra.mxu2 %v4007_v6  ;;  %4383 = vmatpush.bf16.msra.mxu3 %v4007_v6  ;;  %v4014_v6 = vld [vmem:[%s5267_s23 + $0x40] sm:$0xff]  ;;  %v3510_v0 = vld [vmem:[%s5253_s9 + $0x50] sm:$0xf]  ;;  %v3969_v1 = vld [vmem:[%s5253_s9 + $0x58] sm:$0xf0] }
  0x8f   : > { %v5471_v3 = vor.u32 %v3969_v1, %v3510_v0  ;;  %v3516_v5 = vld [vmem:[%s5253_s9 + $0x6c] sm:$0xf0] }
  0x91   : > { %1276 = vmatpush.bf16.msra.mxu0 %v4006_v7  ;;  %4384 = vmatpush.bf16.msra.mxu1 %v4006_v7 }
  0x92   : > { %4385 = vmatpush.bf16.msra.mxu2 %v4006_v7  ;;  %4386 = vmatpush.bf16.msra.mxu3 %v4006_v7  ;;  %v4038_v7 = vld [vmem:[%s5273_s12 + $0x40] sm:$0xff] }
  0x94   : > { %1277 = vmatmul.bf16.vlgmr.msra.gmra.mxu0 %v5307_v18  ;;  %1297 = vmatmul.bf16.vlgmr.msra.gmra.mxu1 %v5309_v19 }
  0x95   : > { %1317 = vmatmul.bf16.vlgmr.msra.gmra.mxu2 %v5311_v20  ;;  %1337 = vmatmul.bf16.vlgmr.msra.gmra.mxu3 %v5313_v21 }
  0x96   : > { %1447 = vmatpush.bf16.msrb.mxu2 %v4029_v16  ;;  %1824 = vmatpush.bf16.msrb.mxu3 %v4037_v17  ;;  %v3502_v16 = vld [vmem:[%s5253_s9 + $0x48] sm:$0xf]  ;;  %v3968_v17 = vld [vmem:[%s5253_s9 + $0x50] sm:$0xf0] }
  0x97   : > { %1358 = vmatpush.bf16.msrb.mxu1 %v4021_v22  ;;  %1913 = vmatpush.bf16.msrb.mxu0 %v4045_v23  ;;  %v3550_v22 = vld [vmem:[%s5253_s9 + $0xa8] sm:$0xf]  ;;  %v3980_v23 = vld [vmem:[%s5253_s9 + $0xb0] sm:$0xf0] }
  0x9a   : > { %1448 = vmatpush.bf16.msrb.mxu2 %v4028_v24  ;;  %1825 = vmatpush.bf16.msrb.mxu3 %v4036_v25  ;;  %v3598_v24 = vld [vmem:[%s5253_s9 + $0x108] sm:$0xf]  ;;  %v3992_v25 = vld [vmem:[%s5253_s9 + $0x110] sm:$0xf0] }
  0x9b   : > { %1359 = vmatpush.bf16.msrb.mxu1 %v4020_v26  ;;  %1914 = vmatpush.bf16.msrb.mxu0 %v4044_v27  ;;  %v3646_v26 = vld [vmem:[%s5253_s9 + $0x168] sm:$0xf]  ;;  %v4004_v27 = vld [vmem:[%s5253_s9 + $0x170] sm:$0xf0] }
  0x9e   : > { %1449 = vmatpush.bf16.msrb.mxu2 %v4027_v28  ;;  %1826 = vmatpush.bf16.msrb.mxu3 %v4035_v29  ;;  %v5401_v28 = vor.u32 %v3968_v17, %v3502_v16  ;;  %v5403_v29 = vor.u32 %v3980_v23, %v3550_v22  ;;  %v4058_v16 = vld [vmem:[%s5276_s7 + $0x20] sm:$0xff] }
  0x9f   : > { %1360 = vmatpush.bf16.msrb.mxu1 %v4019_v30  ;;  %1915 = vmatpush.bf16.msrb.mxu0 %v4043_v31  ;;  %v5405_v30 = vor.u32 %v3992_v25, %v3598_v24  ;;  %v5407_v31 = vor.u32 %v4004_v27, %v3646_v26  ;;  %v4066_v17 = vld [vmem:[%s5276_s7 + $0x60] sm:$0xff] }
  0xa0   : > { %6312 = vst [vmem:[#allocation47_spill] sm:$0xff] %v5403_v29  ;;  %v4050_v26 = vld [vmem:[%s5273_s12 + $0xa0] sm:$0xff] }
  0xa1   : > { %v4074_v27 = vld [vmem:[%s5276_s7 + $0xa0] sm:$0xff] }
  0xa2   : > { %1450 = vmatpush.bf16.msrb.mxu2 %v4026_v33  ;;  %1827 = vmatpush.bf16.msrb.mxu3 %v4034_v34  ;;  %v3468_v33 = vld [vmem:[%s5253_s9 + $0xc] sm:$0xf0]  ;;  %v3474_v34 = vld [vmem:[%s5253_s9 + $0x8] sm:$0xf] }
  0xa3   : > { %1361 = vmatpush.bf16.msrb.mxu1 %v4018_v42  ;;  %1916 = vmatpush.bf16.msrb.mxu0 %v4042_v43  ;;  %v5417_v36 = vor.u32 %v3958_v32, %v3468_v33  ;;  %v5419_v37 = vor.u32 %v3960_v35, %v3474_v34  ;;  %v3961_v42 = vld [vmem:[%s5253_s9 + $0x1c] sm:$0xf]  ;;  %v3480_v43 = vld [vmem:[%s5253_s9 + $0x24] sm:$0xf0]  ;;  %v3534_v34 = vld [vmem:[%s5253_s9 + $0x80] sm:$0xf] }
  0xa4   : > { %1282 = vmatmul.bf16.gmra.mxu0 %v5343_v46  ;;  %1302 = vmatmul.bf16.gmra.mxu1 %v5345_v47  ;;  %v3973_v32 = vld [vmem:[%s5253_s9 + $0x7c] sm:$0xf]  ;;  %v3528_v33 = vld [vmem:[%s5253_s9 + $0x84] sm:$0xf0]  ;;  %v3975_v35 = vld [vmem:[%s5253_s9 + $0x88] sm:$0xf0] }
  0xa5   : > { %1322 = vmatmul.bf16.gmra.mxu2 %v5347_v48  ;;  %1342 = vmatmul.bf16.gmra.mxu3 %v5349_v49 }
  0xa6   : > { %1451 = vmatpush.bf16.msrb.mxu2 %v4025_v44  ;;  %1828 = vmatpush.bf16.msrb.mxu3 %v4033_v45  ;;  %v3486_v44 = vld [vmem:[%s5253_s9 + $0x20] sm:$0xf]  ;;  %v3963_v45 = vld [vmem:[%s5253_s9 + $0x28] sm:$0xf0] }
  0xa7   : > { %1362 = vmatpush.bf16.msrb.mxu1 %v4017_v50  ;;  %1917 = vmatpush.bf16.msrb.mxu0 %v4041_v51  ;;  %v5441_v50 = vor.u32 %v3961_v42, %v3480_v43  ;;  %v5443_v51 = vor.u32 %v3963_v45, %v3486_v44  ;;  %v5519_v43 = vor.u32 %v3975_v35, %v3534_v34  ;;  %v3558_v34 = vld [vmem:[%s5253_s9 + $0xb0] sm:$0xf]  ;;  %v3981_v35 = vld [vmem:[%s5253_s9 + $0xb8] sm:$0xf0] }
  0xa9   : > { %6316 = vst [vmem:[#allocation50_spill] sm:$0xff] %v5519_v43 }
  0xaa   : > { %1452 = vmatpush.bf16.msrb.mxu2 %v4024_v52  ;;  %1829 = vmatpush.bf16.msrb.mxu3 %v4032_v53  ;;  %v3964_v52 = vld [vmem:[%s5253_s9 + $0x34] sm:$0xf]  ;;  %v3492_v53 = vld [vmem:[%s5253_s9 + $0x3c] sm:$0xf0] }
  0xab   : > { %1363 = vmatpush.bf16.msrb.mxu1 %v4016_v54  ;;  %1918 = vmatpush.bf16.msrb.mxu0 %v4040_v55  ;;  %v3498_v54 = vld [vmem:[%s5253_s9 + $0x38] sm:$0xf]  ;;  %v3966_v55 = vld [vmem:[%s5253_s9 + $0x40] sm:$0xf0] }
  0xae   : > { %1453 = vmatpush.bf16.msrb.mxu2 %v4023_v56  ;;  %1830 = vmatpush.bf16.msrb.mxu3 %v4031_v57  ;;  %v5453_v56 = vor.u32 %v3964_v52, %v3492_v53  ;;  %v5455_v57 = vor.u32 %v3966_v55, %v3498_v54  ;;  %v3976_v54 = vld [vmem:[%s5253_s9 + $0x94] sm:$0xf]  ;;  %v3540_v55 = vld [vmem:[%s5253_s9 + $0x9c] sm:$0xf0] }
  0xaf   : > { %1364 = vmatpush.bf16.msrb.mxu1 %v4015_v58  ;;  %1919 = vmatpush.bf16.msrb.mxu0 %v4039_v59  ;;  %v4059_v58 = vld [vmem:[%s5276_s7 + $0x28] sm:$0xff] }
  0xb0   : > { %v4067_v59 = vld [vmem:[%s5276_s7 + $0x68] sm:$0xff] }
  0xb2   : > { %1454 = vmatpush.bf16.msrb.mxu2 %v4022_v61  ;;  %1831 = vmatpush.bf16.msrb.mxu3 %v4030_v62  ;;  %v4075_v61 = vld [vmem:[%s5276_s7 + $0xa8] sm:$0xff] }
  0xb3   : > { %1365 = vmatpush.bf16.msrb.mxu1 %v4014_v6  ;;  %1920 = vmatpush.bf16.msrb.mxu0 %v4038_v7  ;;  %v3967_v62 = vld [vmem:[%s5253_s9 + $0x4c] sm:$0xf]  ;;  %v3522_v6 = vld [vmem:[%s5253_s9 + $0x68] sm:$0xf]  ;;  %v3972_v7 = vld [vmem:[%s5253_s9 + $0x70] sm:$0xf0] }
  0xb4   : > { %1287 = vmatmul.bf16.gmra.mxu0 %v5377_v8  ;;  %1307 = vmatmul.bf16.gmra.mxu1 %v5379_v9  ;;  %v5469_v2 = vor.u32 %v3967_v62, %v3504_v63  ;;  %v5541_v62 = vor.u32 %v3976_v54, %v3540_v55 }
  0xb5   : > { %1327 = vmatmul.bf16.gmra.mxu2 %v5381_v10  ;;  %1347 = vmatmul.bf16.gmra.mxu3 %v5383_v11 }
  0xb6   : > { %2379 = vmatpush.bf16.msra.mxu2 %v4061_v12  ;;  %2468 = vmatpush.bf16.msra.mxu3 %v4069_v13  ;;  %v5481_v12 = vor.u32 %v3970_v4, %v3516_v5  ;;  %6319 = vst [vmem:[#allocation53_spill] sm:$0xff] %v5541_v62  ;;  %v4057_v4 = vld [vmem:[%s5276_s7 + $0x18] sm:$0xff] }
  0xb7   : > { %2002 = vmatpush.bf16.msra.mxu1 %v4053_v14  ;;  %2557 = vmatpush.bf16.msra.mxu0 %v4077_v15  ;;  %v5487_v15 = vor.u32 %v3972_v7, %v3522_v6  ;;  %v4065_v5 = vld [vmem:[%s5276_s7 + $0x58] sm:$0xff] }
  0xba   : > { %2380 = vmatpush.bf16.msra.mxu2 %v4060_v38  ;;  %2469 = vmatpush.bf16.msra.mxu3 %v4068_v39 }
  0xbb   : > { %2003 = vmatpush.bf16.msra.mxu1 %v4052_v40  ;;  %2558 = vmatpush.bf16.msra.mxu0 %v4076_v41  ;;  %v5513_v40 = vor.u32 %v3973_v32, %v3528_v33  ;;  %v3979_v32 = vld [vmem:[%s5253_s9 + $0xac] sm:$0xf]  ;;  %v3552_v33 = vld [vmem:[%s5253_s9 + $0xb4] sm:$0xf0] }
  0xbd   : > { %6315 = vst [vmem:[#allocation49_spill] sm:$0xff] %v5513_v40 }
  0xbe   : > { %2381 = vmatpush.bf16.msra.mxu2 %v4059_v58  ;;  %2470 = vmatpush.bf16.msra.mxu3 %v4067_v59  ;;  %v3546_v58 = vld [vmem:[%s5253_s9 + $0x98] sm:$0xf]  ;;  %v3978_v59 = vld [vmem:[%s5253_s9 + $0xa0] sm:$0xf0] }
  0xbf   : > { %2004 = vmatpush.bf16.msra.mxu1 %v4051_v60  ;;  %2559 = vmatpush.bf16.msra.mxu0 %v4075_v61  ;;  %v5547_v1 = vor.u32 %v3978_v59, %v3546_v58  ;;  %v5573_v58 = vor.u32 %v3979_v32, %v3552_v33 }
  0xc1   : > { %6320 = vst [vmem:[#allocation54_spill] sm:$0xff] %v5547_v1 }
  0xc2   : > { %2382 = vmatpush.bf16.msra.mxu2 %v4058_v16  ;;  %2471 = vmatpush.bf16.msra.mxu3 %v4066_v17  ;;  %6323 = vst [vmem:[#allocation57_spill] sm:$0xff] %v5573_v58 }
  0xc3   : > { %2005 = vmatpush.bf16.msra.mxu1 %v4050_v26  ;;  %2560 = vmatpush.bf16.msra.mxu0 %v4074_v27  ;;  %v4049_v26 = vld [vmem:[%s5273_s12 + $0x98] sm:$0xff] }
  0xc4   : > { %1292 = vmatmul.bf16.gmra.mxu0 %v5401_v28  ;;  %1312 = vmatmul.bf16.gmra.mxu1 %v5403_v29  ;;  %v4073_v27 = vld [vmem:[%s5276_s7 + $0x98] sm:$0xff] }
  0xc5   : > { %1332 = vmatmul.bf16.gmra.mxu2 %v5405_v30  ;;  %1352 = vmatmul.bf16.gmra.mxu3 %v5407_v31 }
  0xc6   : > { %2383 = vmatpush.bf16.msra.mxu2 %v4057_v4  ;;  %2472 = vmatpush.bf16.msra.mxu3 %v4065_v5  ;;  %v5579_v5 = vor.u32 %v3981_v35, %v3558_v34  ;;  %v3982_v34 = vld [vmem:[%s5253_s9 + $0xc4] sm:$0xf]  ;;  %v3564_v35 = vld [vmem:[%s5253_s9 + $0xcc] sm:$0xf0] }
  0xc7   : > { %2006 = vmatpush.bf16.msra.mxu1 %v4049_v26  ;;  %2561 = vmatpush.bf16.msra.mxu0 %v4073_v27 }
  0xc8   : > { %6324 = vst [vmem:[#allocation58_spill] sm:$0xff] %v5579_v5 }
  0xd4   : > { %1366 = vmatmul.bf16.vlgmr.msrb.gmra.mxu1 %v5417_v36  ;;  %1921 = vmatmul.bf16.vlgmr.msrb.gmra.mxu0 %v5417_v36 }
  0xd5   : > { %1455 = vmatmul.bf16.vlgmr.msrb.gmra.mxu2 %v5419_v37  ;;  %1832 = vmatmul.bf16.vlgmr.msrb.gmra.mxu3 %v5307_v18 }
  0xe4   : > { %1371 = vmatmul.bf16.gmra.mxu1 %v5441_v50  ;;  %1926 = vmatmul.bf16.gmra.mxu0 %v5441_v50 }
  0xe5   : > { %1460 = vmatmul.bf16.gmra.mxu2 %v5443_v51  ;;  %1837 = vmatmul.bf16.gmra.mxu3 %v5343_v46 }
  0xf4   : > { %1376 = vmatmul.bf16.gmra.mxu1 %v5453_v56  ;;  %1931 = vmatmul.bf16.gmra.mxu0 %v5453_v56 }
  0xf5   : > { %1465 = vmatmul.bf16.gmra.mxu2 %v5455_v57  ;;  %1842 = vmatmul.bf16.gmra.mxu3 %v5377_v8 }
 0x104   : > { %1381 = vmatmul.bf16.gmra.mxu1 %v5469_v2  ;;  %1936 = vmatmul.bf16.gmra.mxu0 %v5469_v2 }
 0x105   : > { %1470 = vmatmul.bf16.gmra.mxu2 %v5471_v3  ;;  %1847 = vmatmul.bf16.gmra.mxu3 %v5401_v28 }
 0x111   : > { %v5483_v13 = vpop.f32.mrf.mxu0  ;;  %v5485_v14 = vpop.f32.mrf.mxu1 }
 0x114   : > { %1386 = vmatmul.bf16.gmra.mxu1 %v5481_v12  ;;  %1941 = vmatmul.bf16.gmra.mxu0 %v5481_v12 }
 0x115   : > { %1475 = vmatmul.bf16.gmra.mxu2 %v5487_v15  ;;  %1852 = vmatmul.bf16.gmra.mxu3 %v5309_v19 }
 0x118   : > { %v5495_v22 = vpop.f32.mrf.mxu2  ;;  %v5497_v23 = vpop.f32.mrf.mxu3 }
 0x119   : > { %v5499_v24 = vpop.f32.mrf.mxu0  ;;  %v5501_v25 = vpop.f32.mrf.mxu1 }
 0x120   : > { %v5509_v38 = vpop.f32.mrf.mxu2  ;;  %v5511_v39 = vpop.f32.mrf.mxu3 }
 0x121   : > { %6314 = vst [vmem:[#allocation48_spill] sm:$0xff] %v5511_v39  ;;  %v5515_v41 = vpop.f32.mrf.mxu0  ;;  %v5517_v42 = vpop.f32.mrf.mxu1 }
 0x124   : > { %1391 = vmatmul.bf16.gmra.mxu1 %v5513_v40  ;;  %1946 = vmatmul.bf16.gmra.mxu0 %v5513_v40  ;;  %v3576_v40 = vld [vmem:[%s5253_s9 + $0xe4] sm:$0xf0] }
 0x125   : > { %1480 = vmatmul.bf16.gmra.mxu2 %v5519_v43  ;;  %1857 = vmatmul.bf16.gmra.mxu3 %v5345_v47  ;;  %v3582_v47 = vld [vmem:[%s5253_s9 + $0xe0] sm:$0xf]  ;;  %v3987_v43 = vld [vmem:[%s5253_s9 + $0xe8] sm:$0xf0] }
 0x128   : > { %v5525_v44 = vpop.f32.mrf.mxu2  ;;  %v5527_v45 = vpop.f32.mrf.mxu3 }
 0x129   : > { %6317 = vst [vmem:[#allocation51_spill] sm:$0xff] %v5527_v45  ;;  %v5529_v52 = vpop.f32.mrf.mxu0  ;;  %v5531_v53 = vpop.f32.mrf.mxu1  ;;  %v4072_v45 = vld [vmem:[%s5276_s7 + $0x90] sm:$0xff] }
 0x12a   : > { %2562 = vmatpush.bf16.msra.mxu0 %v4072_v45 }
 0x130   : > { %v5537_v60 = vpop.f32.mrf.mxu2  ;;  %v5539_v61 = vpop.f32.mrf.mxu3 }
 0x131   : > { %6318 = vst [vmem:[#allocation52_spill] sm:$0xff] %v5539_v61  ;;  %v5543_v63 = vpop.f32.mrf.mxu0  ;;  %v5545_v0 = vpop.f32.mrf.mxu1 }
 0x134   : > { %1396 = vmatmul.bf16.gmra.mxu1 %v5541_v62  ;;  %1951 = vmatmul.bf16.gmra.mxu0 %v5541_v62 }
 0x135   : > { %1485 = vmatmul.bf16.gmra.mxu2 %v5547_v1  ;;  %1862 = vmatmul.bf16.gmra.mxu3 %v5379_v9  ;;  %v4056_v1 = vld [vmem:[%s5276_s7 + $0x10] sm:$0xff] }
 0x136   : > { %2384 = vmatpush.bf16.msra.mxu2 %v4056_v1 }
 0x138   : > { %v5555_v6 = vpop.f32.mrf.mxu2  ;;  %v5557_v7 = vpop.f32.mrf.mxu3 }
 0x139   : > { %6321 = vst [vmem:[#allocation55_spill] sm:$0xff] %v5557_v7  ;;  %v5559_v16 = vpop.f32.mrf.mxu0  ;;  %v5561_v17 = vpop.f32.mrf.mxu1  ;;  %v3984_v7 = vld [vmem:[%s5253_s9 + $0xd0] sm:$0xf0] }
 0x140   : > { %v5569_v54 = vpop.f32.mrf.mxu2  ;;  %v5571_v55 = vpop.f32.mrf.mxu3 }
 0x141   : > { %6322 = vst [vmem:[#allocation56_spill] sm:$0xff] %v5571_v55  ;;  %v5575_v59 = vpop.f32.mrf.mxu0  ;;  %v5577_v4 = vpop.f32.mrf.mxu1  ;;  %v3570_v55 = vld [vmem:[%s5253_s9 + $0xc8] sm:$0xf] }
 0x144   : > { %1401 = vmatmul.bf16.gmra.mxu1 %v5573_v58  ;;  %1956 = vmatmul.bf16.gmra.mxu0 %v5573_v58 }
 0x145   : > { %1490 = vmatmul.bf16.gmra.mxu2 %v5579_v5  ;;  %1867 = vmatmul.bf16.gmra.mxu3 %v5403_v29  ;;  %v5601_v5 = vor.u32 %v3982_v34, %v3564_v35  ;;  %v4064_v34 = vld [vmem:[%s5276_s7 + $0x50] sm:$0xff] }
 0x146   : > { %2473 = vmatpush.bf16.msra.mxu3 %v4064_v34 }
 0x147   : > { %6327 = vst [vmem:[#allocation61_spill] sm:$0xff] %v5601_v5 }
 0x148   : > { %v5585_v26 = vpop.f32.mrf.mxu2  ;;  %v5587_v27 = vpop.f32.mrf.mxu3 }
 0x149   : > { %6325 = vst [vmem:[#allocation59_spill] sm:$0xff] %v5587_v27  ;;  %v5589_v32 = vpop.f32.mrf.mxu0  ;;  %v5591_v33 = vpop.f32.mrf.mxu1  ;;  %v5603_v27 = vor.u32 %v3984_v7, %v3570_v55 }
 0x14b   : > { %6328 = vst [vmem:[#allocation62_spill] sm:$0xff] %v5603_v27 }
 0x150   : > { %v5597_v62 = vpop.f32.mrf.mxu2  ;;  %v5599_v58 = vpop.f32.mrf.mxu3 }
 0x151   : > { %6326 = vst [vmem:[#allocation60_spill] sm:$0xff] %v5599_v58  ;;  %v1367_v29 = vpop.f32.mrf.mxu1  ;;  %v1922_v9 = vpop.f32.mrf.mxu0 }
 0x154   : > { %1406 = vmatmul.bf16.gmra.mxu1 %v5601_v5  ;;  %1961 = vmatmul.bf16.gmra.mxu0 %v5601_v5  ;;  %v4048_v5 = vld [vmem:[%s5273_s12 + $0x90] sm:$0xff] }
 0x155   : > { %1495 = vmatmul.bf16.gmra.mxu2 %v5603_v27  ;;  %1872 = vmatmul.bf16.gmra.mxu3 %v5311_v20  ;;  %v1368_v27 = vadd.f32 %v1367_v29, %v5483_v13  ;;  %v3985_v20 = vld [vmem:[%s5253_s9 + $0xdc] sm:$0xf] }
 0x156   : > { %2007 = vmatpush.bf16.msra.mxu1 %v4048_v5 }
 0x158   : > { %v1456_v35 = vpop.f32.mrf.mxu2  ;;  %v1833_v58 = vpop.f32.mrf.mxu3 }
 0x159   : > { %v5611_v61 = vadd.f32 %v1922_v9, %v1833_v58  ;;  %v1369_v7 = vpop.f32.mrf.mxu1  ;;  %v1924_v55 = vpop.f32.mrf.mxu0  ;;  %v1457_v39 = vadd.f32 %v1456_v35, %v1368_v27  ;;  %v5626_v9 = vld [vmem:[%s621_s16] ss:$0 sm:$0xff]  ;;  %v5637_v27 = vor.u32 %v3987_v43, %v3582_v47 }
 0x15a   : > { %v1370_v1 = vadd.f32 %v1369_v7, %v5499_v24 }
 0x15b   : > { %6329 = vst [vmem:[#allocation63_spill] sm:$0xff] %v5611_v61  ;;  %v5629_v61 = vor.u32 %v3985_v20, %v3576_v40  ;;  %v2749_v35 = vadd.f32 %v5626_v9, %v1457_v39 }
 0x15c   : > { %6331 = vst [vmem:[#allocation65_spill] sm:$0xff] %v5637_v27 }
 0x15d   : > { %6330 = vst [vmem:[#allocation64_spill] sm:$0xff] %v5629_v61 }
 0x160   : > { %v1458_v58 = vpop.f32.mrf.mxu2  ;;  %v1835_v34 = vpop.f32.mrf.mxu3 }
 0x161   : > { %v1459_v29 = vadd.f32 %v1458_v58, %v1370_v1  ;;  %v5635_v13 = vadd.f32 %v1924_v55, %v1835_v34  ;;  %v1372_v45 = vpop.f32.mrf.mxu1  ;;  %v1927_v5 = vpop.f32.mrf.mxu0  ;;  %v3988_v1 = vld [vmem:[%s5253_s9 + $0xf4] sm:$0xf]  ;;  %v3588_v58 = vld [vmem:[%s5253_s9 + $0xfc] sm:$0xf0]  ;;  %v3594_v34 = vld [vmem:[%s5253_s9 + $0xf8] sm:$0xf] }
 0x162   : > { %v1373_v55 = vadd.f32 %v1372_v45, %v5515_v41 }
 0x163   : > { %v2750_v24 = vadd.f32 %v5626_v9, %v1459_v29  ;;  %v3990_v29 = vld [vmem:[%s5253_s9 + $0x100] sm:$0xf0] }
 0x164   : > { %1411 = vmatmul.bf16.gmra.mxu1 %v5629_v61  ;;  %1966 = vmatmul.bf16.gmra.mxu0 %v5629_v61  ;;  %v5661_v41 = vor.u32 %v3990_v29, %v3594_v34  ;;  %v4047_v34 = vld [vmem:[%s5273_s12 + $0x88] sm:$0xff] }
 0x165   : > { %v4081_v20 = vpack.c.bf16 %v2750_v24, %v2749_v35  ;;  %1500 = vmatmul.bf16.gmra.mxu2 %v5637_v27  ;;  %1877 = vmatmul.bf16.gmra.mxu3 %v5347_v48  ;;  %v4071_v29 = vld [vmem:[%s5276_s7 + $0x88] sm:$0xff] }
 0x166   : > { %6334 = vst [vmem:[#allocation68_spill] sm:$0xff] %v5661_v41  ;;  %2008 = vmatpush.bf16.msra.mxu1 %v4047_v34  ;;  %2563 = vmatpush.bf16.msra.mxu0 %v4071_v29 }
 0x167   : > { %4082 = vst [vmem:[%s5646_s11] sm:$0xff] %v4081_v20   ;;  %v5657_v20 = vor.u32 %v3988_v1, %v3588_v58 }
 0x168   : > { %v1461_v47 = vpop.f32.mrf.mxu2  ;;  %v1838_v39 = vpop.f32.mrf.mxu3 }
 0x169   : > { %v5649_v40 = vadd.f32 %v1927_v5, %v1838_v39  ;;  %v1374_v43 = vpop.f32.mrf.mxu1  ;;  %v1929_v7 = vpop.f32.mrf.mxu0  ;;  %v1462_v35 = vadd.f32 %v1461_v47, %v1373_v55  ;;  %6333 = vst [vmem:[#allocation67_spill] sm:$0xff] %v5657_v20 }
 0x16a   : > { %v1375_v24 = vadd.f32 %v1374_v43, %v5529_v52 }
 0x16b   : > { %6332 = vst [vmem:[#allocation66_spill] sm:$0xff] %v5649_v40  ;;  %v2751_v45 = vadd.f32 %v5626_v9, %v1462_v35 }
 0x170   : > { %v1463_v61 = vpop.f32.mrf.mxu2  ;;  %v1840_v48 = vpop.f32.mrf.mxu3 }
 0x171   : > { %v1464_v5 = vadd.f32 %v1463_v61, %v1375_v24  ;;  %v5659_v39 = vadd.f32 %v1929_v7, %v1840_v48  ;;  %v1377_v40 = vpop.f32.mrf.mxu1  ;;  %v1932_v27 = vpop.f32.mrf.mxu0  ;;  %v4055_v48 = vld [vmem:[%s5276_s7 + $0x8] sm:$0xff] }
 0x172   : > { %v4063_v61 = vld [vmem:[%s5276_s7 + $0x48] sm:$0xff]  ;;  %2385 = vmatpush.bf16.msra.mxu2 %v4055_v48  ;;  %v1378_v35 = vadd.f32 %v1377_v40, %v5543_v63 }
 0x173   : > { %v2752_v47 = vadd.f32 %v5626_v9, %v1464_v5  ;;  %2474 = vmatpush.bf16.msra.mxu3 %v4063_v61  ;;  %v3991_v24 = vld [vmem:[%s5253_s9 + $0x10c] sm:$0xf]  ;;  %v3600_v5 = vld [vmem:[%s5253_s9 + $0x114] sm:$0xf0] }
 0x174   : > { %1416 = vmatmul.bf16.gmra.mxu1 %v5657_v20  ;;  %1971 = vmatmul.bf16.gmra.mxu0 %v5657_v20 }
 0x175   : > { %v4086_v52 = vpack.c.bf16 %v2752_v47, %v2751_v45  ;;  %1505 = vmatmul.bf16.gmra.mxu2 %v5661_v41  ;;  %1882 = vmatmul.bf16.gmra.mxu3 %v5381_v10  ;;  %v3606_v45 = vld [vmem:[%s5253_s9 + $0x110] sm:$0xf]  ;;  %v3993_v47 = vld [vmem:[%s5253_s9 + $0x118] sm:$0xf0] }
 0x176   : > { %v5686_v63 = vor.u32 %v3993_v47, %v3606_v45  ;;  %v3618_v45 = vld [vmem:[%s5253_s9 + $0x128] sm:$0xf]  ;;  %v3996_v47 = vld [vmem:[%s5253_s9 + $0x130] sm:$0xf0] }
 0x177   : > { %4318 = vst [vmem:[%s5646_s11 + $0x8] sm:$0xff] %v4086_v52  }
 0x178   : > { %v1466_v43 = vpop.f32.mrf.mxu2  ;;  %v1843_v7 = vpop.f32.mrf.mxu3 }
 0x179   : > { %v5672_v55 = vadd.f32 %v1932_v27, %v1843_v7  ;;  %v1379_v1 = vpop.f32.mrf.mxu1  ;;  %v1934_v58 = vpop.f32.mrf.mxu0  ;;  %v1467_v52 = vadd.f32 %v1466_v43, %v1378_v35 }
 0x17a   : > { %v1380_v20 = vadd.f32 %v1379_v1, %v5559_v16 }
 0x17b   : > { %6335 = vst [vmem:[#allocation69_spill] sm:$0xff] %v5672_v55  ;;  %v5682_v55 = vor.u32 %v3991_v24, %v3600_v5  ;;  %v2753_v40 = vadd.f32 %v5626_v9, %v1467_v52  ;;  %v3994_v24 = vld [vmem:[%s5253_s9 + $0x124] sm:$0xf]  ;;  %v3612_v5 = vld [vmem:[%s5253_s9 + $0x12c] sm:$0xf0] }
 0x180   : > { %v1468_v27 = vpop.f32.mrf.mxu2  ;;  %v1845_v7 = vpop.f32.mrf.mxu3 }
 0x181   : > { %v1469_v48 = vadd.f32 %v1468_v27, %v1380_v20  ;;  %v5684_v61 = vadd.f32 %v1934_v58, %v1845_v7  ;;  %v1382_v10 = vpop.f32.mrf.mxu1  ;;  %v1937_v41 = vpop.f32.mrf.mxu0 }
 0x182   : > { %v1383_v35 = vadd.f32 %v1382_v10, %v5575_v59  ;;  %v5707_v10 = vor.u32 %v3996_v47, %v3618_v45 }
 0x183   : > { %v2754_v43 = vadd.f32 %v5626_v9, %v1469_v48 }
 0x184   : > { %1421 = vmatmul.bf16.gmra.mxu1 %v5682_v55  ;;  %1976 = vmatmul.bf16.gmra.mxu0 %v5682_v55  ;;  %6337 = vst [vmem:[#allocation71_spill] sm:$0xff] %v5707_v10 }
 0x185   : > { %v4091_v16 = vpack.c.bf16 %v2754_v43, %v2753_v40  ;;  %1510 = vmatmul.bf16.gmra.mxu2 %v5686_v63  ;;  %1887 = vmatmul.bf16.gmra.mxu3 %v5405_v30  ;;  %v5703_v40 = vor.u32 %v3994_v24, %v3612_v5 }
 0x187   : > { %4319 = vst [vmem:[%s5646_s11 + $0x10] sm:$0xff] %v4091_v16  }
 0x188   : > { %v1471_v20 = vpop.f32.mrf.mxu2  ;;  %v1848_v1 = vpop.f32.mrf.mxu3  ;;  %6336 = vst [vmem:[#allocation70_spill] sm:$0xff] %v5703_v40 }
 0x189   : > { %v5695_v58 = vadd.f32 %v1937_v41, %v1848_v1  ;;  %v1384_v34 = vpop.f32.mrf.mxu1  ;;  %v1939_v29 = vpop.f32.mrf.mxu0  ;;  %v1472_v52 = vadd.f32 %v1471_v20, %v1383_v35 }
 0x18a   : > { %v1385_v27 = vadd.f32 %v1384_v34, %v5589_v32  ;;  %v4054_v34 = vld [vmem:[%s5276_s7] sm:$0xff] }
 0x18b   : > { %v2755_v59 = vadd.f32 %v5626_v9, %v1472_v52  ;;  %2386 = vmatpush.bf16.msra.mxu2 %v4054_v34  ;;  %v4046_v52 = vld [vmem:[%s5273_s12 + $0x80] sm:$0xff]  ;;  %s6378_s12 = sld [smem:[#allocation83_spill]] }
 0x18c   : > { %2009 = vmatpush.bf16.msra.mxu1 %v4046_v52 }
 0x190   : > { %v1473_v7 = vpop.f32.mrf.mxu2  ;;  %v1850_v48 = vpop.f32.mrf.mxu3 }
 0x191   : > { %v1474_v41 = vadd.f32 %v1473_v7, %v1385_v27  ;;  %v5705_v43 = vadd.f32 %v1939_v29, %v1850_v48  ;;  %v1387_v16 = vpop.f32.mrf.mxu1  ;;  %v1942_v1 = vpop.f32.mrf.mxu0  ;;  %v4062_v29 = vld [vmem:[%s5276_s7 + $0x40] sm:$0xff]  ;;  %v3997_v48 = vld [vmem:[%s5253_s9 + $0x13c] sm:$0xf] }
 0x192   : > { %2475 = vmatpush.bf16.msra.mxu3 %v4062_v29  ;;  %v4070_v27 = vld [vmem:[%s5276_s7 + $0x80] sm:$0xff]  ;;  %v1388_v7 = vadd.f32 %v1387_v16, %v5485_v14  ;;  %s6379_s7 = smov %s6378_s12 }
 0x193   : > { %v2756_v20 = vadd.f32 %v5626_v9, %v1474_v41  ;;  %v3624_v41 = vld [vmem:[%s5253_s9 + $0x144] sm:$0xf0]  ;;  %2564 = vmatpush.bf16.msra.mxu0 %v4070_v27  ;;  %s4768_s16 = scalar_lea.hbm %s6379_s7, 768 }
 0x194   : > { %1426 = vmatmul.bf16.gmra.mxu1 %v5703_v40  ;;  %1981 = vmatmul.bf16.gmra.mxu0 %v5703_v40 }
 0x195   : > { %v4096_v32 = vpack.c.bf16 %v2756_v20, %v2755_v59  ;;  %1515 = vmatmul.bf16.gmra.mxu2 %v5707_v10  ;;  %1892 = vmatmul.bf16.gmra.mxu3 %v5313_v21  ;;  %v3630_v59 = vld [vmem:[%s5253_s9 + $0x140] sm:$0xf]  ;;  %v3999_v20 = vld [vmem:[%s5253_s9 + $0x148] sm:$0xf0] }
 0x196   : > { %v5732_v14 = vor.u32 %v3999_v20, %v3630_v59  ;;  %v3642_v59 = vld [vmem:[%s5253_s9 + $0x158] sm:$0xf]  ;;  %v4002_v20 = vld [vmem:[%s5253_s9 + $0x160] sm:$0xf0] }
 0x197   : > { %4320 = vst [vmem:[%s5646_s11 + $0x18] sm:$0xff] %v4096_v32  }
 0x198   : > { %v1476_v35 = vpop.f32.mrf.mxu2  ;;  %v1853_v24 = vpop.f32.mrf.mxu3 }
 0x199   : > { %v5718_v5 = vadd.f32 %v1942_v1, %v1853_v24  ;;  %v1389_v45 = vpop.f32.mrf.mxu1  ;;  %v1944_v47 = vpop.f32.mrf.mxu0  ;;  %v1477_v32 = vadd.f32 %v1476_v35, %v1388_v7 }
 0x19a   : > { %v1390_v40 = vadd.f32 %v1389_v45, %v5501_v25 }
 0x19b   : > { %6338 = vst [vmem:[#allocation72_spill] sm:$0xff] %v5718_v5  ;;  %v5728_v5 = vor.u32 %v3997_v48, %v3624_v41  ;;  %v2757_v16 = vadd.f32 %v5626_v9, %v1477_v32  ;;  %v4000_v48 = vld [vmem:[%s5253_s9 + $0x154] sm:$0xf]  ;;  %v3636_v41 = vld [vmem:[%s5253_s9 + $0x15c] sm:$0xf0] }
 0x1a0   : > { %v1478_v1 = vpop.f32.mrf.mxu2  ;;  %v1855_v24 = vpop.f32.mrf.mxu3 }
 0x1a1   : > { %v1479_v34 = vadd.f32 %v1478_v1, %v1390_v40  ;;  %v5730_v29 = vadd.f32 %v1944_v47, %v1855_v24  ;;  %v1392_v21 = vpop.f32.mrf.mxu1  ;;  %v1947_v10 = vpop.f32.mrf.mxu0 }
 0x1a2   : > { %v1393_v7 = vadd.f32 %v1392_v21, %v5517_v42 }
 0x1a3   : > { %v2758_v35 = vadd.f32 %v5626_v9, %v1479_v34 }
 0x1a4   : > { %1431 = vmatmul.bf16.gmra.mxu1 %v5728_v5  ;;  %1986 = vmatmul.bf16.gmra.mxu0 %v5728_v5 }
 0x1a5   : > { %v4101_v25 = vpack.c.bf16 %v2758_v35, %v2757_v16  ;;  %1520 = vmatmul.bf16.gmra.mxu2 %v5732_v14  ;;  %1897 = vmatmul.bf16.gmra.mxu3 %v5349_v49  ;;  %v5749_v16 = vor.u32 %v4000_v48, %v3636_v41 }
 0x1a7   : > { %4321 = vst [vmem:[%s5646_s11 + $0x20] sm:$0xff] %v4101_v25  }
 0x1a8   : > { %v1481_v40 = vpop.f32.mrf.mxu2  ;;  %v1858_v45 = vpop.f32.mrf.mxu3  ;;  %6340 = vst [vmem:[#allocation74_spill] sm:$0xff] %v5749_v16 }
 0x1a9   : > { %v5741_v47 = vadd.f32 %v1947_v10, %v1858_v45  ;;  %v1394_v52 = vpop.f32.mrf.mxu1  ;;  %v1949_v27 = vpop.f32.mrf.mxu0  ;;  %v1482_v32 = vadd.f32 %v1481_v40, %v1393_v7 }
 0x1aa   : > { %v1395_v1 = vadd.f32 %v1394_v52, %v5531_v53 }
 0x1ab   : > { %6339 = vst [vmem:[#allocation73_spill] sm:$0xff] %v5741_v47  ;;  %v5753_v47 = vor.u32 %v4002_v20, %v3642_v59  ;;  %v2759_v21 = vadd.f32 %v5626_v9, %v1482_v32  ;;  %v4003_v59 = vld [vmem:[%s5253_s9 + $0x16c] sm:$0xf]  ;;  %v3648_v20 = vld [vmem:[%s5253_s9 + $0x174] sm:$0xf0] }
 0x1ac   : > { %v3654_v32 = vld [vmem:[%s5253_s9 + $0x170] sm:$0xf] }
 0x1b0   : > { %v1483_v24 = vpop.f32.mrf.mxu2  ;;  %v1860_v34 = vpop.f32.mrf.mxu3 }
 0x1b1   : > { %v1484_v35 = vadd.f32 %v1483_v24, %v1395_v1  ;;  %v5751_v25 = vadd.f32 %v1949_v27, %v1860_v34  ;;  %v1397_v10 = vpop.f32.mrf.mxu1  ;;  %v1952_v45 = vpop.f32.mrf.mxu0  ;;  %v4005_v1 = vld [vmem:[%s5253_s9 + $0x178] sm:$0xf0]  ;;  %s4394_s9 = smul.u32 96, %s6377_s19 }
 0x1b2   : > { %v1398_v41 = vadd.f32 %v1397_v10, %v5545_v0 }
 0x1b3   : > { %v2760_v42 = vadd.f32 %v5626_v9, %v1484_v35  ;;  %s3131_s30 = sadd.s32 %s6311_s28, %s4394_s9 }
 0x1b4   : > { %1436 = vmatmul.bf16.gmra.mxu1 %v5749_v16  ;;  %1991 = vmatmul.bf16.gmra.mxu0 %v5749_v16  ;;  %s6009_s27 = sshll.u32 %s3131_s30, 2 }
 0x1b5   : > { %v4106_v53 = vpack.c.bf16 %v2760_v42, %v2759_v21  ;;  %1525 = vmatmul.bf16.gmra.mxu2 %v5753_v47  ;;  %1902 = vmatmul.bf16.gmra.mxu3 %v5383_v11  ;;  %v5770_v42 = vor.u32 %v4003_v59, %v3648_v20  ;;  %s3133_s14 = scalar_lea.hbm %s6378_s12, %s6009_s27 }
 0x1b6   : > { %s6021_s18 = sshll.u32 %s3133_s14, 4  ;;  %s3137_s18 = int_to_ptr.hbm [resolvable:$true] %s6021_s18 }
 0x1b7   : > { %4322 = vst [vmem:[%s5646_s11 + $0x28] sm:$0xff] %v4106_v53   ;;  %s4762_s28 = sshra.s32 %s3137_s18, 4  ;;  %s4763_s28 = int_to_ptr.hbm [resolvable:$true] %s4762_s28 }
 0x1b8   : > { %v1486_v40 = vpop.f32.mrf.mxu2  ;;  %v1863_v52 = vpop.f32.mrf.mxu3  ;;  %s4764_s21 = scalar_lea.hbm %s4763_s28, 128  ;;  %p4769_p6 = scmp.lt.s32.totalorder %s4763_s28, %s6379_s7 }
 0x1b9   : > { %v5762_v27 = vadd.f32 %v1952_v45, %v1863_v52  ;;  %v1399_v7 = vpop.f32.mrf.mxu1  ;;  %v1954_v48 = vpop.f32.mrf.mxu0  ;;  %v1487_v24 = vadd.f32 %v1486_v40, %v1398_v41  ;;  %p4765_p7 = scmp.ne.s32.totalorder %s4763_s28, %s4764_s21  ;;  %p4770_p8 = scmp.lt.s32.totalorder %s4768_s16, %s4764_s21 }
 0x1ba   : > { %v1400_v34 = vadd.f32 %v1399_v7, %v5561_v17 }
 0x1bb   : > { %6341 = vst [vmem:[#allocation75_spill] sm:$0xff] %v5762_v27  ;;  %v5774_v27 = vor.u32 %v4005_v1, %v3654_v32  ;;  %v2761_v0 = vadd.f32 %v5626_v9, %v1487_v24  ;;  %p4766_p10 = pnand %p4765_p7, %p5205_p0  ;;  %p4771_p9 = por %p4770_p8, %p4769_p6 }
 0x1bd   : > { %p4767_p5 = pneg %p4766_p10 }
 0x1bf   : > { %p4772_p11 = pnand %p4771_p9, %p4767_p5 }
 0x1c0   : > { %v1488_v35 = vpop.f32.mrf.mxu2  ;;  %v1865_v21 = vpop.f32.mrf.mxu3 }
 0x1c1   : > { %v1489_v53 = vadd.f32 %v1488_v35, %v1400_v34  ;;  %v5772_v16 = vadd.f32 %v1954_v48, %v1865_v21  ;;  %v1402_v45 = vpop.f32.mrf.mxu1  ;;  %v1957_v52 = vpop.f32.mrf.mxu0 }
 0x1c2   : > { %v1403_v20 = vadd.f32 %v1402_v45, %v5577_v4 }
 0x1c3   : > { %v2762_v10 = vadd.f32 %v5626_v9, %v1489_v53 }
 0x1c4   : > { %1441 = vmatmul.bf16.gmra.mxu1 %v5770_v42  ;;  %1996 = vmatmul.bf16.gmra.mxu0 %v5770_v42 }
 0x1c5   : > { %v4111_v17 = vpack.c.bf16 %v2762_v10, %v2761_v0  ;;  %1530 = vmatmul.bf16.gmra.mxu2 %v5774_v27  ;;  %1907 = vmatmul.bf16.gmra.mxu3 %v5407_v31 }
 0x1c7   : > { %4323 = vst [vmem:[%s5646_s11 + $0x30] sm:$0xff] %v4111_v17  }
 0x1c8   : > { %v1491_v40 = vpop.f32.mrf.mxu2  ;;  %v1868_v7 = vpop.f32.mrf.mxu3 }
 0x1c9   : > { %v5783_v48 = vadd.f32 %v1957_v52, %v1868_v7  ;;  %v1404_v41 = vpop.f32.mrf.mxu1  ;;  %v1959_v59 = vpop.f32.mrf.mxu0  ;;  %v1492_v32 = vadd.f32 %v1491_v40, %v1403_v20 }
 0x1ca   : > { %v1405_v1 = vadd.f32 %v1404_v41, %v5591_v33 }
 0x1cb   : > { %v2763_v10 = vadd.f32 %v5626_v9, %v1492_v32 }
 0x1d0   : > { %v1493_v24 = vpop.f32.mrf.mxu2  ;;  %v1870_v34 = vpop.f32.mrf.mxu3 }
 0x1d1   : > { %v1494_v35 = vadd.f32 %v1493_v24, %v1405_v1  ;;  %v5787_v21 = vadd.f32 %v1959_v59, %v1870_v34  ;;  %v1407_v53 = vpop.f32.mrf.mxu1  ;;  %v1962_v0 = vpop.f32.mrf.mxu0 }
 0x1d2   : > { %v1408_v41 = vadd.f32 %v1407_v53, %v5495_v22 }
 0x1d3   : > { %v2764_v52 = vadd.f32 %v5626_v9, %v1494_v35 }
 0x1d4   : > { %2010 = vmatmul.bf16.vlgmr.msra.gmra.mxu1 %v5419_v37  ;;  %2565 = vmatmul.bf16.vlgmr.msra.gmra.mxu0 %v5419_v37 }
 0x1d5   : > { %v4116_v4 = vpack.c.bf16 %v2764_v52, %v2763_v10  ;;  %2387 = vmatmul.bf16.vlgmr.msra.gmra.mxu2 %v5307_v18  ;;  %2476 = vmatmul.bf16.vlgmr.msra.gmra.mxu3 %v5417_v36 }
 0x1d7   : > { %4324 = vst [vmem:[%s5646_s11 + $0x38] sm:$0xff] %v4116_v4  }
 0x1d8   : > { %v1496_v33 = vpop.f32.mrf.mxu2  ;;  %v1873_v45 = vpop.f32.mrf.mxu3 }
 0x1d9   : > { %v5796_v17 = vadd.f32 %v1962_v0, %v1873_v45  ;;  %v1409_v40 = vpop.f32.mrf.mxu1  ;;  %v1964_v7 = vpop.f32.mrf.mxu0  ;;  %v1497_v59 = vadd.f32 %v1496_v33, %v1408_v41 }
 0x1da   : > { %v1410_v20 = vadd.f32 %v1409_v40, %v5509_v38 }
 0x1db   : > { %v2765_v34 = vadd.f32 %v5626_v9, %v1497_v59 }
 0x1e0   : > { %v1498_v32 = vpop.f32.mrf.mxu2  ;;  %v1875_v37 = vpop.f32.mrf.mxu3 }
 0x1e1   : > { %v1499_v1 = vadd.f32 %v1498_v32, %v1410_v20  ;;  %v5800_v24 = vadd.f32 %v1964_v7, %v1875_v37  ;;  %v1412_v18 = vpop.f32.mrf.mxu1  ;;  %v1967_v36 = vpop.f32.mrf.mxu0 }
 0x1e2   : > { %v1413_v4 = vadd.f32 %v1412_v18, %v5525_v44 }
 0x1e3   : > { %v2766_v35 = vadd.f32 %v5626_v9, %v1499_v1 }
 0x1e4   : > { %2015 = vmatmul.bf16.gmra.mxu1 %v5443_v51  ;;  %2570 = vmatmul.bf16.gmra.mxu0 %v5443_v51 }
 0x1e5   : > { %v4121_v22 = vpack.c.bf16 %v2766_v35, %v2765_v34  ;;  %2392 = vmatmul.bf16.gmra.mxu2 %v5343_v46  ;;  %2481 = vmatmul.bf16.gmra.mxu3 %v5441_v50 }
 0x1e7   : > { %4325 = vst [vmem:[%s5646_s11 + $0x40] sm:$0xff] %v4121_v22  }
 0x1e8   : > { %v1501_v38 = vpop.f32.mrf.mxu2  ;;  %v1878_v53 = vpop.f32.mrf.mxu3 }
 0x1e9   : > { %v5809_v0 = vadd.f32 %v1967_v36, %v1878_v53  ;;  %v1414_v10 = vpop.f32.mrf.mxu1  ;;  %v1969_v52 = vpop.f32.mrf.mxu0  ;;  %v1502_v33 = vadd.f32 %v1501_v38, %v1413_v4 }
 0x1ea   : > { %v1415_v45 = vadd.f32 %v1414_v10, %v5537_v60 }
 0x1eb   : > { %v2767_v59 = vadd.f32 %v5626_v9, %v1502_v33 }
 0x1f0   : > { %v1503_v40 = vpop.f32.mrf.mxu2  ;;  %v1880_v51 = vpop.f32.mrf.mxu3 }
 0x1f1   : > { %v1504_v7 = vadd.f32 %v1503_v40, %v1415_v45  ;;  %v5813_v41 = vadd.f32 %v1969_v52, %v1880_v51  ;;  %v1417_v46 = vpop.f32.mrf.mxu1  ;;  %v1972_v50 = vpop.f32.mrf.mxu0 }
 0x1f2   : > { %v1418_v36 = vadd.f32 %v1417_v46, %v5555_v6 }
 0x1f3   : > { %v2768_v20 = vadd.f32 %v5626_v9, %v1504_v7 }
 0x1f4   : > { %2020 = vmatmul.bf16.gmra.mxu1 %v5455_v57  ;;  %2575 = vmatmul.bf16.gmra.mxu0 %v5455_v57 }
 0x1f5   : > { %v4126_v44 = vpack.c.bf16 %v2768_v20, %v2767_v59  ;;  %2397 = vmatmul.bf16.gmra.mxu2 %v5377_v8  ;;  %2486 = vmatmul.bf16.gmra.mxu3 %v5453_v56 }
 0x1f7   : > { %4326 = vst [vmem:[%s5646_s11 + $0x48] sm:$0xff] %v4126_v44  }
 0x1f8   : > { %v1506_v60 = vpop.f32.mrf.mxu2  ;;  %v1883_v32 = vpop.f32.mrf.mxu3 }
 0x1f9   : > { %v5822_v37 = vadd.f32 %v1972_v50, %v1883_v32  ;;  %v1419_v1 = vpop.f32.mrf.mxu1  ;;  %v1974_v18 = vpop.f32.mrf.mxu0  ;;  %v1507_v34 = vadd.f32 %v1506_v60, %v1418_v36 }
 0x1fa   : > { %v1420_v35 = vadd.f32 %v1419_v1, %v5569_v54 }
 0x1fb   : > { %v2769_v10 = vadd.f32 %v5626_v9, %v1507_v34 }
 0x200   : > { %v1508_v22 = vpop.f32.mrf.mxu2  ;;  %v1885_v57 = vpop.f32.mrf.mxu3 }
 0x201   : > { %v1509_v38 = vadd.f32 %v1508_v22, %v1420_v35  ;;  %v5826_v53 = vadd.f32 %v1974_v18, %v1885_v57  ;;  %v1422_v8 = vpop.f32.mrf.mxu1  ;;  %v1977_v56 = vpop.f32.mrf.mxu0  ;;  %v6342_v22 = vld [vmem:[#allocation48_spill] sm:$0xff] }
 0x202   : > { %v1423_v51 = vadd.f32 %v1422_v8, %v5585_v26 }
 0x203   : > { %v2770_v52 = vadd.f32 %v5626_v9, %v1509_v38 }
 0x204   : > { %2025 = vmatmul.bf16.gmra.mxu1 %v5471_v3  ;;  %2580 = vmatmul.bf16.gmra.mxu0 %v5471_v3 }
 0x205   : > { %v4131_v6 = vpack.c.bf16 %v2770_v52, %v2769_v10  ;;  %2402 = vmatmul.bf16.gmra.mxu2 %v5401_v28  ;;  %2491 = vmatmul.bf16.gmra.mxu3 %v5469_v2 }
 0x207   : > { %4327 = vst [vmem:[%s5646_s11 + $0x50] sm:$0xff] %v4131_v6   ;;  %v6343_v6 = vld [vmem:[#allocation50_spill] sm:$0xff] }
 0x208   : > { %v1511_v54 = vpop.f32.mrf.mxu2  ;;  %v1888_v4 = vpop.f32.mrf.mxu3 }
 0x209   : > { %v5835_v33 = vadd.f32 %v1977_v56, %v1888_v4  ;;  %v1424_v45 = vpop.f32.mrf.mxu1  ;;  %v1979_v40 = vpop.f32.mrf.mxu0  ;;  %v1512_v7 = vadd.f32 %v1511_v54, %v1423_v51  ;;  %v6344_v54 = vld [vmem:[#allocation43_spill] sm:$0xff]  ;;  %v6345_v4 = vld [vmem:[#allocation49_spill] sm:$0xff] }
 0x20a   : > { %v1425_v46 = vadd.f32 %v1424_v45, %v5597_v62 }
 0x20b   : > { %v2771_v44 = vadd.f32 %v5626_v9, %v1512_v7 }
 0x210   : > { %v1513_v50 = vpop.f32.mrf.mxu2  ;;  %v1890_v3 = vpop.f32.mrf.mxu3 }
 0x211   : > { %v1514_v59 = vadd.f32 %v1513_v50, %v1425_v46  ;;  %v5839_v20 = vadd.f32 %v1979_v40, %v1890_v3  ;;  %v1427_v28 = vpop.f32.mrf.mxu1  ;;  %v1982_v2 = vpop.f32.mrf.mxu0  ;;  %v6346_v50 = vld [vmem:[#allocation51_spill] sm:$0xff] }
 0x212   : > { %v1428_v34 = vadd.f32 %v1427_v28, %v5497_v23  ;;  %v6347_v28 = vld [vmem:[#allocation52_spill] sm:$0xff] }
 0x213   : > { %v2772_v60 = vadd.f32 %v5626_v9, %v1514_v59 }
 0x214   : > { %2030 = vmatmul.bf16.gmra.mxu1 %v5487_v15  ;;  %2585 = vmatmul.bf16.gmra.mxu0 %v5487_v15 }
 0x215   : > { %v4136_v26 = vpack.c.bf16 %v2772_v60, %v2771_v44  ;;  %2407 = vmatmul.bf16.gmra.mxu2 %v5309_v19  ;;  %2496 = vmatmul.bf16.gmra.mxu3 %v5481_v12 }
 0x217   : > { %4328 = vst [vmem:[%s5646_s11 + $0x58] sm:$0xff] %v4136_v26  }
 0x218   : > { %v1516_v62 = vpop.f32.mrf.mxu2  ;;  %v1893_v32 = vpop.f32.mrf.mxu3 }
 0x219   : > { %v5848_v1 = vadd.f32 %v1982_v2, %v1893_v32  ;;  %v1429_v18 = vpop.f32.mrf.mxu1  ;;  %v1984_v36 = vpop.f32.mrf.mxu0  ;;  %v1517_v35 = vadd.f32 %v1516_v62, %v1428_v34 }
 0x21a   : > { %v1430_v57 = vadd.f32 %v1429_v18, %v6342_v22 }
 0x21b   : > { %v2773_v10 = vadd.f32 %v5626_v9, %v1517_v35  ;;  %v6348_v35 = vld [vmem:[#allocation54_spill] sm:$0xff] }
 0x220   : > { %v1518_v38 = vpop.f32.mrf.mxu2  ;;  %v1895_v15 = vpop.f32.mrf.mxu3 }
 0x221   : > { %v1519_v8 = vadd.f32 %v1518_v38, %v1430_v57  ;;  %v5852_v56 = vadd.f32 %v1984_v36, %v1895_v15  ;;  %v1432_v19 = vpop.f32.mrf.mxu1  ;;  %v1987_v12 = vpop.f32.mrf.mxu0  ;;  %v6349_v57 = vld [vmem:[#allocation45_spill] sm:$0xff] }
 0x222   : > { %v1433_v3 = vadd.f32 %v1432_v19, %v6346_v50  ;;  %v6350_v38 = vld [vmem:[#allocation53_spill] sm:$0xff] }
 0x223   : > { %v2774_v52 = vadd.f32 %v5626_v9, %v1519_v8 }
 0x224   : > { %2035 = vmatmul.bf16.gmra.mxu1 %v6343_v6  ;;  %2590 = vmatmul.bf16.gmra.mxu0 %v6343_v6 }
 0x225   : > { %v4141_v23 = vpack.c.bf16 %v2774_v52, %v2773_v10  ;;  %2412 = vmatmul.bf16.gmra.mxu2 %v6344_v54  ;;  %2501 = vmatmul.bf16.gmra.mxu3 %v6345_v4  ;;  %v6351_v52 = vld [vmem:[#allocation55_spill] sm:$0xff]  ;;  %v6352_v54 = vld [vmem:[#allocation56_spill] sm:$0xff] }
 0x227   : > { %4329 = vst [vmem:[%s5646_s11 + $0x60] sm:$0xff] %v4141_v23  }
 0x228   : > { %v1521_v45 = vpop.f32.mrf.mxu2  ;;  %v1898_v40 = vpop.f32.mrf.mxu3 }
 0x229   : > { %v5861_v51 = vadd.f32 %v1987_v12, %v1898_v40  ;;  %v1434_v7 = vpop.f32.mrf.mxu1  ;;  %v1989_v46 = vpop.f32.mrf.mxu0  ;;  %v1522_v59 = vadd.f32 %v1521_v45, %v1433_v3 }
 0x22a   : > { %v1435_v2 = vadd.f32 %v1434_v7, %v6347_v28 }
 0x22b   : > { %v2775_v36 = vadd.f32 %v5626_v9, %v1522_v59 }
 0x230   : > { %v1523_v44 = vpop.f32.mrf.mxu2  ;;  %v1900_v60 = vpop.f32.mrf.mxu3 }
 0x231   : > { %v1524_v26 = vadd.f32 %v1523_v44, %v1435_v2  ;;  %v5865_v62 = vadd.f32 %v1989_v46, %v1900_v60  ;;  %v1437_v32 = vpop.f32.mrf.mxu1  ;;  %v1992_v18 = vpop.f32.mrf.mxu0  ;;  %v6353_v2 = vld [vmem:[#allocation58_spill] sm:$0xff]  ;;  %v6354_v60 = vld [vmem:[#allocation47_spill] sm:$0xff] }
 0x232   : > { %v1438_v6 = vadd.f32 %v1437_v32, %v6351_v52 }
 0x233   : > { %v2776_v34 = vadd.f32 %v5626_v9, %v1524_v26  ;;  %v6355_v26 = vld [vmem:[#allocation57_spill] sm:$0xff] }
 0x234   : > { %2040 = vmatmul.bf16.gmra.mxu1 %v6348_v35  ;;  %2595 = vmatmul.bf16.gmra.mxu0 %v6348_v35 }
 0x235   : > { %v4146_v22 = vpack.c.bf16 %v2776_v34, %v2775_v36  ;;  %2417 = vmatmul.bf16.gmra.mxu2 %v6349_v57  ;;  %2506 = vmatmul.bf16.gmra.mxu3 %v6350_v38 }
 0x237   : > { %4330 = vst [vmem:[%s5646_s11 + $0x68] sm:$0xff] %v4146_v22   ;;  %v6356_v22 = vld [vmem:[#allocation59_spill] sm:$0xff] }
 0x238   : > { %v1526_v15 = vpop.f32.mrf.mxu2  ;;  %v1903_v8 = vpop.f32.mrf.mxu3 }
 0x239   : > { %v5874_v19 = vadd.f32 %v1992_v18, %v1903_v8  ;;  %v1439_v12 = vpop.f32.mrf.mxu1  ;;  %v1994_v10 = vpop.f32.mrf.mxu0  ;;  %v1527_v23 = vadd.f32 %v1526_v15, %v1438_v6  ;;  %v6357_v15 = vld [vmem:[#allocation60_spill] sm:$0xff] }
 0x23a   : > { %v1440_v4 = vadd.f32 %v1439_v12, %v6352_v54 }
 0x23b   : > { %v2777_v59 = vadd.f32 %v5626_v9, %v1527_v23 }
 0x240   : > { %v1528_v45 = vpop.f32.mrf.mxu2  ;;  %v1905_v40 = vpop.f32.mrf.mxu3 }
 0x241   : > { %v1529_v7 = vadd.f32 %v1528_v45, %v1440_v4  ;;  %v5878_v46 = vadd.f32 %v1994_v10, %v1905_v40  ;;  %v1442_v50 = vpop.f32.mrf.mxu1  ;;  %v1997_v3 = vpop.f32.mrf.mxu0  ;;  %v6358_v40 = vld [vmem:[#allocation62_spill] sm:$0xff] }
 0x242   : > { %v1443_v57 = vadd.f32 %v1442_v50, %v6356_v22  ;;  %v6359_v50 = vld [vmem:[#allocation41_spill] sm:$0xff] }
 0x243   : > { %v2778_v28 = vadd.f32 %v5626_v9, %v1529_v7 }
 0x244   : > { %2045 = vmatmul.bf16.gmra.mxu1 %v6353_v2  ;;  %2600 = vmatmul.bf16.gmra.mxu0 %v6353_v2  ;;  %v5903_v2 = vld [vmem:[%s533_s17] ss:$0 sm:$0xff]  ;;  %s3134_s17 = sshll.u32 %s5646_s11, 4  ;;  %s6019_s17 = int_to_ptr.vmem [resolvable:$true] %s3134_s17 }
 0x245   : > { %v4151_v44 = vpack.c.bf16 %v2778_v28, %v2777_v59  ;;  %2422 = vmatmul.bf16.gmra.mxu2 %v6354_v60  ;;  %2511 = vmatmul.bf16.gmra.mxu3 %v6355_v26  ;;  %v6361_v59 = vld [vmem:[#allocation63_spill] sm:$0xff] }
 0x247   : > { %4331 = vst [vmem:[%s5646_s11 + $0x70] sm:$0xff] %v4151_v44  }
 0x248   : > { %v1531_v32 = vpop.f32.mrf.mxu2  ;;  %v1908_v18 = vpop.f32.mrf.mxu3 }
 0x249   : > { %v5887_v36 = vadd.f32 %v1997_v3, %v1908_v18  ;;  %v1444_v34 = vpop.f32.mrf.mxu1  ;;  %v1999_v35 = vpop.f32.mrf.mxu0  ;;  %v1532_v38 = vadd.f32 %v1531_v32, %v1443_v57  ;;  %v6360_v3 = vld [vmem:[#allocation61_spill] sm:$0xff] }
 0x24a   : > { %v1445_v8 = vadd.f32 %v1444_v34, %v6357_v15 }
 0x24b   : > { %v2779_v4 = vadd.f32 %v5626_v9, %v1532_v38 }
 0x250   : > { %v1533_v12 = vpop.f32.mrf.mxu2  ;;  %v1910_v10 = vpop.f32.mrf.mxu3 }
 0x251   : > { %v1534_v52 = vadd.f32 %v1533_v12, %v1445_v8  ;;  %v5891_v6 = vadd.f32 %v1999_v35, %v1910_v10  ;;  %v2011_v23 = vpop.f32.mrf.mxu1  ;;  %v2566_v54 = vpop.f32.mrf.mxu0  ;;  %v5914_v8 = vld [vmem:[%s542_s6] ss:$0 sm:$0xff]  ;;  %s3110_s6 = scalar_lea.sflag [#allocation7], %s597_s15 }
 0x252   : > { %v2012_v28 = vadd.f32 %v2011_v23, %v6361_v59  ;;  %v6362_v23 = vld [vmem:[#allocation65_spill] sm:$0xff] }
 0x253   : > { %v2780_v45 = vadd.f32 %v5626_v9, %v1534_v52 }
 0x254   : > { %2050 = vmatmul.bf16.gmra.mxu1 %v6358_v40  ;;  %2605 = vmatmul.bf16.gmra.mxu0 %v6358_v40  ;;  %v2881_v18 = vadd.f32 %v5903_v2, %v2012_v28  ;;  %v6363_v40 = vld [vmem:[#allocation44_spill] sm:$0xff] }
 0x255   : > { %v4156_v7 = vpack.c.bf16 %v2780_v45, %v2779_v4  ;;  %2427 = vmatmul.bf16.gmra.mxu2 %v6359_v50  ;;  %2516 = vmatmul.bf16.gmra.mxu3 %v6360_v3  ;;  %v6365_v50 = vld [vmem:[#allocation66_spill] sm:$0xff] }
 0x257   : > { %4332 = vst [vmem:[%s5646_s11 + $0x78] sm:$0xff] %v4156_v7  }
 0x258   : > { %v2388_v44 = vpop.f32.mrf.mxu2  ;;  %v2477_v60 = vpop.f32.mrf.mxu3 }
 0x259   : > { %v2013_v9 = vpop.f32.mrf.mxu1  ;;  %v2568_v26 = vpop.f32.mrf.mxu0  ;;  %v2478_v35 = vadd.f32 %v2477_v60, %v2388_v44 }
 0x25a   : > { %v2014_v32 = vadd.f32 %v2013_v9, %v5635_v13 }
 0x25b   : > { %v2567_v15 = vadd.f32 %v2566_v54, %v2478_v35  ;;  %v6364_v54 = vld [vmem:[#allocation64_spill] sm:$0xff] }
 0x25c   : > { %v2882_v34 = vadd.f32 %v5903_v2, %v2014_v32 }
 0x25d   : > { %v3013_v4 = vadd.f32 %v5914_v8, %v2567_v15 }
 0x25e   : > { %v4161_v22 = vpack.c.bf16 %v2882_v34, %v2881_v18 }
 0x260   : > { %4162 = vst [vmem:[%s5909_s3] sm:$0xff] %v4161_v22   ;;  %v2390_v57 = vpop.f32.mrf.mxu2  ;;  %v2479_v38 = vpop.f32.mrf.mxu3 }
 0x261   : > { %v2480_v12 = vadd.f32 %v2479_v38, %v2390_v57  ;;  %v2016_v10 = vpop.f32.mrf.mxu1  ;;  %v2571_v13 = vpop.f32.mrf.mxu0 }
 0x262   : > { %v2017_v3 = vadd.f32 %v2016_v10, %v6365_v50 }
 0x263   : > { %v2569_v52 = vadd.f32 %v2568_v26, %v2480_v12 }
 0x264   : > { %2055 = vmatmul.bf16.gmra.mxu1 %v6362_v23  ;;  %2610 = vmatmul.bf16.gmra.mxu0 %v6362_v23  ;;  %v2883_v26 = vadd.f32 %v5903_v2, %v2017_v3 }
 0x265   : > { %v3014_v45 = vadd.f32 %v5914_v8, %v2569_v52  ;;  %2432 = vmatmul.bf16.gmra.mxu2 %v6363_v40  ;;  %2521 = vmatmul.bf16.gmra.mxu3 %v6364_v54  ;;  %v6366_v52 = vld [vmem:[#allocation68_spill] sm:$0xff]  ;;  %v6369_v54 = vld [vmem:[#allocation69_spill] sm:$0xff] }
 0x267   : > { %v4241_v7 = vpack.c.bf16 %v3014_v45, %v3013_v4  ;;  %v6367_v4 = vld [vmem:[#allocation46_spill] sm:$0xff]  ;;  %v6368_v45 = vld [vmem:[#allocation67_spill] sm:$0xff] }
 0x268   : > { %v2393_v59 = vpop.f32.mrf.mxu2  ;;  %v2482_v28 = vpop.f32.mrf.mxu3 }
 0x269   : > { %4242 = vst [vmem:[%s5924_s1] sm:$0xff] %v4241_v7   ;;  %v2018_v44 = vpop.f32.mrf.mxu1  ;;  %v2573_v60 = vpop.f32.mrf.mxu0  ;;  %v2483_v18 = vadd.f32 %v2482_v28, %v2393_v59 }
 0x26a   : > { %v2019_v9 = vadd.f32 %v2018_v44, %v5659_v39 }
 0x26b   : > { %v2572_v57 = vadd.f32 %v2571_v13, %v2483_v18 }
 0x26c   : > { %v2884_v32 = vadd.f32 %v5903_v2, %v2019_v9 }
 0x26d   : > { %v3015_v39 = vadd.f32 %v5914_v8, %v2572_v57 }
 0x26e   : > { %v4166_v34 = vpack.c.bf16 %v2884_v32, %v2883_v26 }
 0x270   : > { %4333 = vst [vmem:[%s5909_s3 + $0x8] sm:$0xff] %v4166_v34   ;;  %v2395_v35 = vpop.f32.mrf.mxu2  ;;  %v2484_v22 = vpop.f32.mrf.mxu3 }
 0x271   : > { %v2485_v38 = vadd.f32 %v2484_v22, %v2395_v35  ;;  %v2021_v15 = vpop.f32.mrf.mxu1  ;;  %v2576_v12 = vpop.f32.mrf.mxu0 }
 0x272   : > { %v2022_v13 = vadd.f32 %v2021_v15, %v6369_v54 }
 0x273   : > { %v2574_v10 = vadd.f32 %v2573_v60, %v2485_v38 }
 0x274   : > { %2060 = vmatmul.bf16.gmra.mxu1 %v6366_v52  ;;  %2615 = vmatmul.bf16.gmra.mxu0 %v6366_v52  ;;  %v2885_v44 = vadd.f32 %v5903_v2, %v2022_v13 }
 0x275   : > { %v3016_v23 = vadd.f32 %v5914_v8, %v2574_v10  ;;  %2437 = vmatmul.bf16.gmra.mxu2 %v6367_v4  ;;  %2526 = vmatmul.bf16.gmra.mxu3 %v6368_v45 }
 0x277   : > { %v4246_v40 = vpack.c.bf16 %v3016_v23, %v3015_v39 }
 0x278   : > { %v2398_v7 = vpop.f32.mrf.mxu2  ;;  %v2487_v50 = vpop.f32.mrf.mxu3 }
 0x279   : > { %4348 = vst [vmem:[%s5924_s1 + $0x8] sm:$0xff] %v4246_v40   ;;  %v2023_v3 = vpop.f32.mrf.mxu1  ;;  %v2578_v59 = vpop.f32.mrf.mxu0  ;;  %v2488_v9 = vadd.f32 %v2487_v50, %v2398_v7 }
 0x27a   : > { %v2024_v28 = vadd.f32 %v2023_v3, %v5684_v61 }
 0x27b   : > { %v2577_v34 = vadd.f32 %v2576_v12, %v2488_v9  ;;  %v6372_v9 = vld [vmem:[#allocation70_spill] sm:$0xff] }
 0x27c   : > { %v2886_v60 = vadd.f32 %v5903_v2, %v2024_v28  ;;  %v6370_v28 = vld [vmem:[#allocation71_spill] sm:$0xff] }
 0x27d   : > { %v3017_v61 = vadd.f32 %v5914_v8, %v2577_v34 }
 0x27e   : > { %v4171_v26 = vpack.c.bf16 %v2886_v60, %v2885_v44  ;;  %v6371_v60 = vld [vmem:[#allocation42_spill] sm:$0xff] }
 0x280   : > { %4334 = vst [vmem:[%s5909_s3 + $0x10] sm:$0xff] %v4171_v26   ;;  %v2400_v32 = vpop.f32.mrf.mxu2  ;;  %v2489_v18 = vpop.f32.mrf.mxu3 }
 0x281   : > { %v2490_v35 = vadd.f32 %v2489_v18, %v2400_v32  ;;  %v2026_v22 = vpop.f32.mrf.mxu1  ;;  %v2581_v57 = vpop.f32.mrf.mxu0  ;;  %v6373_v32 = vld [vmem:[#allocation72_spill] sm:$0xff] }
 0x282   : > { %v2027_v12 = vadd.f32 %v2026_v22, %v5695_v58 }
 0x283   : > { %v2579_v38 = vadd.f32 %v2578_v59, %v2490_v35 }
 0x284   : > { %2065 = vmatmul.bf16.gmra.mxu1 %v5686_v63  ;;  %2620 = vmatmul.bf16.gmra.mxu0 %v5686_v63  ;;  %v2887_v63 = vadd.f32 %v5903_v2, %v2027_v12 }
 0x285   : > { %v3018_v15 = vadd.f32 %v5914_v8, %v2579_v38  ;;  %2442 = vmatmul.bf16.gmra.mxu2 %v5405_v30  ;;  %2531 = vmatmul.bf16.gmra.mxu3 %v5682_v55 }
 0x287   : > { %v4251_v10 = vpack.c.bf16 %v3018_v15, %v3017_v61 }
 0x288   : > { %v2403_v52 = vpop.f32.mrf.mxu2  ;;  %v2492_v39 = vpop.f32.mrf.mxu3 }
 0x289   : > { %4349 = vst [vmem:[%s5924_s1 + $0x10] sm:$0xff] %v4251_v10   ;;  %v2028_v23 = vpop.f32.mrf.mxu1  ;;  %v2583_v4 = vpop.f32.mrf.mxu0  ;;  %v2493_v54 = vadd.f32 %v2492_v39, %v2403_v52 }
 0x28a   : > { %v2029_v45 = vadd.f32 %v2028_v23, %v5705_v43 }
 0x28b   : > { %v2582_v55 = vadd.f32 %v2581_v57, %v2493_v54 }
 0x28c   : > { %v2888_v40 = vadd.f32 %v5903_v2, %v2029_v45 }
 0x28d   : > { %v3019_v43 = vadd.f32 %v5914_v8, %v2582_v55 }
 0x28e   : > { %v4176_v13 = vpack.c.bf16 %v2888_v40, %v2887_v63 }
 0x290   : > { %4335 = vst [vmem:[%s5909_s3 + $0x18] sm:$0xff] %v4176_v13   ;;  %v2405_v30 = vpop.f32.mrf.mxu2  ;;  %v2494_v7 = vpop.f32.mrf.mxu3 }
 0x291   : > { %v2495_v50 = vadd.f32 %v2494_v7, %v2405_v30  ;;  %v2031_v58 = vpop.f32.mrf.mxu1  ;;  %v2586_v3 = vpop.f32.mrf.mxu0  ;;  %v6374_v30 = vld [vmem:[#allocation73_spill] sm:$0xff] }
 0x292   : > { %v2032_v18 = vadd.f32 %v2031_v58, %v6373_v32 }
 0x293   : > { %v2584_v59 = vadd.f32 %v2583_v4, %v2495_v50 }
 0x294   : > { %2070 = vmatmul.bf16.gmra.mxu1 %v6370_v28  ;;  %2625 = vmatmul.bf16.gmra.mxu0 %v6370_v28  ;;  %v2889_v61 = vadd.f32 %v5903_v2, %v2032_v18 }
 0x295   : > { %v3020_v44 = vadd.f32 %v5914_v8, %v2584_v59  ;;  %2447 = vmatmul.bf16.gmra.mxu2 %v6371_v60  ;;  %2536 = vmatmul.bf16.gmra.mxu3 %v6372_v9 }
 0x297   : > { %v4256_v26 = vpack.c.bf16 %v3020_v44, %v3019_v43 }
 0x298   : > { %v2408_v34 = vpop.f32.mrf.mxu2  ;;  %v2497_v35 = vpop.f32.mrf.mxu3 }
 0x299   : > { %4350 = vst [vmem:[%s5924_s1 + $0x18] sm:$0xff] %v4256_v26   ;;  %v2033_v22 = vpop.f32.mrf.mxu1  ;;  %v2588_v57 = vpop.f32.mrf.mxu0  ;;  %v2498_v10 = vadd.f32 %v2497_v35, %v2408_v34  ;;  %v6375_v35 = vld [vmem:[#allocation74_spill] sm:$0xff] }
 0x29a   : > { %v2034_v38 = vadd.f32 %v2033_v22, %v5730_v29 }
 0x29b   : > { %v2587_v23 = vadd.f32 %v2586_v3, %v2498_v10 }
 0x29c   : > { %v2890_v15 = vadd.f32 %v5903_v2, %v2034_v38 }
 0x29d   : > { %v3021_v29 = vadd.f32 %v5914_v8, %v2587_v23 }
 0x29e   : > { %v4181_v12 = vpack.c.bf16 %v2890_v15, %v2889_v61 }
 0x2a0   : > { %4336 = vst [vmem:[%s5909_s3 + $0x20] sm:$0xff] %v4181_v12   ;;  %v2410_v52 = vpop.f32.mrf.mxu2  ;;  %v2499_v39 = vpop.f32.mrf.mxu3 }
 0x2a1   : > { %v2500_v4 = vadd.f32 %v2499_v39, %v2410_v52  ;;  %v2036_v45 = vpop.f32.mrf.mxu1  ;;  %v2591_v63 = vpop.f32.mrf.mxu0 }
 0x2a2   : > { %v2037_v7 = vadd.f32 %v2036_v45, %v6374_v30 }
 0x2a3   : > { %v2589_v40 = vadd.f32 %v2588_v57, %v2500_v4  ;;  %v6376_v57 = vld [vmem:[#allocation75_spill] sm:$0xff] }
 0x2a4   : > { %2075 = vmatmul.bf16.gmra.mxu1 %v5732_v14  ;;  %2630 = vmatmul.bf16.gmra.mxu0 %v5732_v14  ;;  %v2891_v14 = vadd.f32 %v5903_v2, %v2037_v7 }
 0x2a5   : > { %v3022_v54 = vadd.f32 %v5914_v8, %v2589_v40  ;;  %2452 = vmatmul.bf16.gmra.mxu2 %v5349_v49  ;;  %2541 = vmatmul.bf16.gmra.mxu3 %v5728_v5 }
 0x2a7   : > { %v4261_v13 = vpack.c.bf16 %v3022_v54, %v3021_v29 }
 0x2a8   : > { %v2413_v55 = vpop.f32.mrf.mxu2  ;;  %v2502_v50 = vpop.f32.mrf.mxu3 }
 0x2a9   : > { %4351 = vst [vmem:[%s5924_s1 + $0x20] sm:$0xff] %v4261_v13   ;;  %v2038_v58 = vpop.f32.mrf.mxu1  ;;  %v2593_v3 = vpop.f32.mrf.mxu0  ;;  %v2503_v43 = vadd.f32 %v2502_v50, %v2413_v55 }
 0x2aa   : > { %v2039_v59 = vadd.f32 %v2038_v58, %v5751_v25 }
 0x2ab   : > { %v2592_v5 = vadd.f32 %v2591_v63, %v2503_v43 }
 0x2ac   : > { %v2892_v28 = vadd.f32 %v5903_v2, %v2039_v59 }
 0x2ad   : > { %v3023_v25 = vadd.f32 %v5914_v8, %v2592_v5 }
 0x2ae   : > { %v4186_v44 = vpack.c.bf16 %v2892_v28, %v2891_v14 }
 0x2b0   : > { %4337 = vst [vmem:[%s5909_s3 + $0x28] sm:$0xff] %v4186_v44   ;;  %v2415_v49 = vpop.f32.mrf.mxu2  ;;  %v2504_v60 = vpop.f32.mrf.mxu3 }
 0x2b1   : > { %v2505_v9 = vadd.f32 %v2504_v60, %v2415_v49  ;;  %v2041_v26 = vpop.f32.mrf.mxu1  ;;  %v2596_v32 = vpop.f32.mrf.mxu0 }
 0x2b2   : > { %v2042_v38 = vadd.f32 %v2041_v26, %v6376_v57 }
 0x2b3   : > { %v2594_v18 = vadd.f32 %v2593_v3, %v2505_v9 }
 0x2b4   : > { %2080 = vmatmul.bf16.gmra.mxu1 %v5753_v47  ;;  %2635 = vmatmul.bf16.gmra.mxu0 %v5753_v47  ;;  %v2893_v47 = vadd.f32 %v5903_v2, %v2042_v38 }
 0x2b5   : > { %v3024_v34 = vadd.f32 %v5914_v8, %v2594_v18  ;;  %2457 = vmatmul.bf16.gmra.mxu2 %v5383_v11  ;;  %2546 = vmatmul.bf16.gmra.mxu3 %v6375_v35 }
 0x2b7   : > { %v4266_v22 = vpack.c.bf16 %v3024_v34, %v3023_v25 }
 0x2b8   : > { %v2418_v61 = vpop.f32.mrf.mxu2  ;;  %v2507_v15 = vpop.f32.mrf.mxu3 }
 0x2b9   : > { %4352 = vst [vmem:[%s5924_s1 + $0x28] sm:$0xff] %v4266_v22   ;;  %v2043_v10 = vpop.f32.mrf.mxu1  ;;  %v2598_v12 = vpop.f32.mrf.mxu0  ;;  %v2508_v23 = vadd.f32 %v2507_v15, %v2418_v61 }
 0x2ba   : > { %v2044_v52 = vadd.f32 %v2043_v10, %v5772_v16 }
 0x2bb   : > { %v2597_v63 = vadd.f32 %v2596_v32, %v2508_v23 }
 0x2bc   : > { %v2894_v39 = vadd.f32 %v5903_v2, %v2044_v52 }
 0x2bd   : > { %v3025_v16 = vadd.f32 %v5914_v8, %v2597_v63 }
 0x2be   : > { %v4191_v4 = vpack.c.bf16 %v2894_v39, %v2893_v47 }
 0x2c0   : > { %4338 = vst [vmem:[%s5909_s3 + $0x30] sm:$0xff] %v4191_v4   ;;  %v2420_v11 = vpop.f32.mrf.mxu2  ;;  %v2509_v45 = vpop.f32.mrf.mxu3 }
 0x2c1   : > { %v2510_v40 = vadd.f32 %v2509_v45, %v2420_v11  ;;  %v2046_v29 = vpop.f32.mrf.mxu1  ;;  %v2601_v54 = vpop.f32.mrf.mxu0 }
 0x2c2   : > { %v2047_v55 = vadd.f32 %v2046_v29, %v5783_v48 }
 0x2c3   : > { %v2599_v13 = vadd.f32 %v2598_v12, %v2510_v40 }
 0x2c4   : > { %2085 = vmatmul.bf16.gmra.mxu1 %v5774_v27  ;;  %2640 = vmatmul.bf16.gmra.mxu0 %v5774_v27  ;;  %v2895_v14 = vadd.f32 %v5903_v2, %v2047_v55 }
 0x2c5   : > { %v3026_v30 = vadd.f32 %v5914_v8, %v2599_v13  ;;  %2462 = vmatmul.bf16.gmra.mxu2 %v5407_v31  ;;  %2551 = vmatmul.bf16.gmra.mxu3 %v5770_v42 }
 0x2c7   : > { %v4271_v7 = vpack.c.bf16 %v3026_v30, %v3025_v16 }
 0x2c8   : > { %v2423_v50 = vpop.f32.mrf.mxu2  ;;  %v2512_v58 = vpop.f32.mrf.mxu3 }
 0x2c9   : > { %4353 = vst [vmem:[%s5924_s1 + $0x30] sm:$0xff] %v4271_v7   ;;  %v2048_v3 = vpop.f32.mrf.mxu1  ;;  %v2603_v59 = vpop.f32.mrf.mxu0  ;;  %v2513_v43 = vadd.f32 %v2512_v58, %v2423_v50 }
 0x2ca   : > { %v2049_v27 = vadd.f32 %v2048_v3, %v5787_v21 }
 0x2cb   : > { %v2602_v48 = vadd.f32 %v2601_v54, %v2513_v43 }
 0x2cc   : > { %v2896_v28 = vadd.f32 %v5903_v2, %v2049_v27 }
 0x2cd   : > { %v3027_v26 = vadd.f32 %v5914_v8, %v2602_v48 }
 0x2ce   : > { %v4196_v31 = vpack.c.bf16 %v2896_v28, %v2895_v14 }
 0x2d0   : > { %4339 = vst [vmem:[%s5909_s3 + $0x38] sm:$0xff] %v4196_v31   ;;  %v2425_v42 = vpop.f32.mrf.mxu2  ;;  %v2514_v44 = vpop.f32.mrf.mxu3 }
 0x2d1   : > { %v2515_v49 = vadd.f32 %v2514_v44, %v2425_v42  ;;  %v2051_v60 = vpop.f32.mrf.mxu1  ;;  %v2606_v5 = vpop.f32.mrf.mxu0 }
 0x2d2   : > { %v2052_v18 = vadd.f32 %v2051_v60, %v5796_v17 }
 0x2d3   : > { %v2604_v9 = vadd.f32 %v2603_v59, %v2515_v49 }
 0x2d4   : > { %v2897_v38 = vadd.f32 %v5903_v2, %v2052_v18 }
 0x2d5   : > { %v3028_v21 = vadd.f32 %v5914_v8, %v2604_v9 }
 0x2d7   : > { %v4276_v32 = vpack.c.bf16 %v3028_v21, %v3027_v26 }
 0x2d8   : > { %v2428_v25 = vpop.f32.mrf.mxu2  ;;  %v2517_v34 = vpop.f32.mrf.mxu3 }
 0x2d9   : > { %4354 = vst [vmem:[%s5924_s1 + $0x38] sm:$0xff] %v4276_v32   ;;  %v2053_v35 = vpop.f32.mrf.mxu1  ;;  %v2608_v22 = vpop.f32.mrf.mxu0  ;;  %v2518_v17 = vadd.f32 %v2517_v34, %v2428_v25 }
 0x2da   : > { %v2054_v57 = vadd.f32 %v2053_v35, %v5800_v24 }
 0x2db   : > { %v2607_v12 = vadd.f32 %v2606_v5, %v2518_v17 }
 0x2dc   : > { %v2898_v61 = vadd.f32 %v5903_v2, %v2054_v57 }
 0x2de   : > { %v4201_v15 = vpack.c.bf16 %v2898_v61, %v2897_v38 }
 0x2e0   : > { %4340 = vst [vmem:[%s5909_s3 + $0x40] sm:$0xff] %v4201_v15   ;;  %v2430_v24 = vpop.f32.mrf.mxu2  ;;  %v2519_v10 = vpop.f32.mrf.mxu3 }
 0x2e1   : > { %v2520_v52 = vadd.f32 %v2519_v10, %v2430_v24  ;;  %v2056_v47 = vpop.f32.mrf.mxu1  ;;  %v2611_v39 = vpop.f32.mrf.mxu0 }
 0x2e2   : > { %4775 = shalt.err (!%p4772_p11)
}
 0x2e3   : > { %s4972_s15 = smov 64   ;;  %s4973_s4 = smov 192   ;;  %v2609_v23 = vadd.f32 %v2608_v22, %v2520_v52  ;;  %v3029_v4 = vadd.f32 %v5914_v8, %v2607_v12  ;;  %v2057_v63 = vadd.f32 %v2056_v47, %v5809_v0 }
 0x2e4   : > { %s4974_s11 = smov 4   ;;  %s6380_s30 = sld [smem:[#allocation84_spill]] }
 0x2e5   : > { %4409 = dma.vmem_to_hbm [thread:$0]  (%p5205_p0), %s6019_s17, 2048, %s3137_s18, %s3110_s6, %s4972_s15, %s4973_s4, %s4974_s11   ;;  %v3030_v11 = vadd.f32 %v5914_v8, %v2609_v23  ;;  %v2899_v30 = vadd.f32 %v5903_v2, %v2057_v63 }
 0x2e6   : > { %s3153_s12 = sshll.u32 %s5909_s3, 4  ;;  %s6382_s6 = sld [smem:[#allocation85_spill]]  ;;  %s3154_s12 = int_to_ptr.vmem [resolvable:$true] %s3153_s12 }
 0x2e7   : > { %v4281_v45 = vpack.c.bf16 %v3030_v11, %v3029_v4  ;;  %s3115_s21 = scalar_lea.sflag [#allocation18], %s5260_s24 }
 0x2e8   : > { %v2433_v40 = vpop.f32.mrf.mxu2  ;;  %v2522_v29 = vpop.f32.mrf.mxu3 }
 0x2e9   : > { %4355 = vst [vmem:[%s5924_s1 + $0x40] sm:$0xff] %v4281_v45   ;;  %v2058_v54 = vpop.f32.mrf.mxu1  ;;  %v2613_v13 = vpop.f32.mrf.mxu0  ;;  %v2523_v55 = vadd.f32 %v2522_v29, %v2433_v40 }
 0x2ea   : > { %v2059_v16 = vadd.f32 %v2058_v54, %v5813_v41  ;;  %s6381_s29 = smov %s6380_s30  ;;  %s3152_s23 = scalar_lea.hbm %s6380_s30, %s6009_s27 }
 0x2eb   : > { %v2612_v59 = vadd.f32 %v2611_v39, %v2523_v55  ;;  %s6099_s14 = sshll.u32 %s3152_s23, 4  ;;  %s3156_s14 = int_to_ptr.hbm [resolvable:$true] %s6099_s14 }
 0x2ec   : > { %v2900_v7 = vadd.f32 %v5903_v2, %v2059_v16  ;;  %s3171_s28 = scalar_lea.hbm %s6382_s6, %s6009_s27  ;;  %s4790_s25 = sshra.s32 %s3156_s14, 4  ;;  %s4791_s25 = int_to_ptr.hbm [resolvable:$true] %s4790_s25 }
 0x2ed   : > { %v3031_v43 = vadd.f32 %v5914_v8, %v2612_v59  ;;  %s4792_s26 = scalar_lea.hbm %s4791_s25, 128  ;;  %p4797_p2 = scmp.lt.s32.totalorder %s4791_s25, %s6381_s29 }
 0x2ee   : > { %v4206_v50 = vpack.c.bf16 %v2900_v7, %v2899_v30  ;;  %p4793_p12 = scmp.ne.s32.totalorder %s4791_s25, %s4792_s26 }
 0x2f0   : > { %4341 = vst [vmem:[%s5909_s3 + $0x48] sm:$0xff] %v4206_v50   ;;  %v2435_v58 = vpop.f32.mrf.mxu2  ;;  %v2524_v3 = vpop.f32.mrf.mxu3  ;;  %p4794_p1 = pnand %p4793_p12, %p5205_p0 }
 0x2f1   : > { %v2525_v27 = vadd.f32 %v2524_v3, %v2435_v58  ;;  %v2061_v0 = vpop.f32.mrf.mxu1  ;;  %v2616_v14 = vpop.f32.mrf.mxu0 }
 0x2f2   : > { %v2062_v42 = vadd.f32 %v2061_v0, %v5822_v37  ;;  %p4795_p3 = pneg %p4794_p1 }
 0x2f3   : > { %v2614_v28 = vadd.f32 %v2613_v13, %v2525_v27 }
 0x2f4   : > { %v2901_v9 = vadd.f32 %v5903_v2, %v2062_v42 }
 0x2f5   : > { %v3032_v41 = vadd.f32 %v5914_v8, %v2614_v28 }
 0x2f7   : > { %v4286_v31 = vpack.c.bf16 %v3032_v41, %v3031_v43 }
 0x2f8   : > { %v2438_v44 = vpop.f32.mrf.mxu2  ;;  %v2527_v48 = vpop.f32.mrf.mxu3 }
 0x2f9   : > { %4356 = vst [vmem:[%s5924_s1 + $0x48] sm:$0xff] %v4286_v31   ;;  %v2063_v49 = vpop.f32.mrf.mxu1  ;;  %v2618_v60 = vpop.f32.mrf.mxu0  ;;  %v2528_v21 = vadd.f32 %v2527_v48, %v2438_v44 }
 0x2fa   : > { %v2064_v5 = vadd.f32 %v2063_v49, %v5826_v53 }
 0x2fb   : > { %v2617_v34 = vadd.f32 %v2616_v14, %v2528_v21 }
 0x2fc   : > { %v2902_v26 = vadd.f32 %v5903_v2, %v2064_v5 }
 0x2fd   : > { %v3033_v38 = vadd.f32 %v5914_v8, %v2617_v34 }
 0x2fe   : > { %v4211_v32 = vpack.c.bf16 %v2902_v26, %v2901_v9 }
 0x300   : > { %4342 = vst [vmem:[%s5909_s3 + $0x50] sm:$0xff] %v4211_v32   ;;  %v2440_v18 = vpop.f32.mrf.mxu2  ;;  %v2529_v25 = vpop.f32.mrf.mxu3 }
 0x301   : > { %v2530_v35 = vadd.f32 %v2529_v25, %v2440_v18  ;;  %v2066_v37 = vpop.f32.mrf.mxu1  ;;  %v2621_v22 = vpop.f32.mrf.mxu0 }
 0x302   : > { %v2067_v17 = vadd.f32 %v2066_v37, %v5835_v33 }
 0x303   : > { %v2619_v57 = vadd.f32 %v2618_v60, %v2530_v35 }
 0x304   : > { %v2903_v47 = vadd.f32 %v5903_v2, %v2067_v17 }
 0x305   : > { %v3034_v53 = vadd.f32 %v5914_v8, %v2619_v57 }
 0x307   : > { %v4291_v61 = vpack.c.bf16 %v3034_v53, %v3033_v38 }
 0x308   : > { %v2443_v15 = vpop.f32.mrf.mxu2  ;;  %v2532_v24 = vpop.f32.mrf.mxu3 }
 0x309   : > { %4357 = vst [vmem:[%s5924_s1 + $0x50] sm:$0xff] %v4291_v61   ;;  %v2068_v10 = vpop.f32.mrf.mxu1  ;;  %v2623_v12 = vpop.f32.mrf.mxu0  ;;  %v2533_v23 = vadd.f32 %v2532_v24, %v2443_v15 }
 0x30a   : > { %v2069_v52 = vadd.f32 %v2068_v10, %v5839_v20 }
 0x30b   : > { %v2622_v63 = vadd.f32 %v2621_v22, %v2533_v23 }
 0x30c   : > { %v2904_v39 = vadd.f32 %v5903_v2, %v2069_v52 }
 0x30d   : > { %v3035_v13 = vadd.f32 %v5914_v8, %v2622_v63 }
 0x30e   : > { %v4216_v4 = vpack.c.bf16 %v2904_v39, %v2903_v47 }
 0x310   : > { %4343 = vst [vmem:[%s5909_s3 + $0x58] sm:$0xff] %v4216_v4   ;;  %v2445_v11 = vpop.f32.mrf.mxu2  ;;  %v2534_v45 = vpop.f32.mrf.mxu3 }
 0x311   : > { %v2535_v40 = vadd.f32 %v2534_v45, %v2445_v11  ;;  %v2071_v33 = vpop.f32.mrf.mxu1  ;;  %v2626_v29 = vpop.f32.mrf.mxu0 }
 0x312   : > { %v2072_v30 = vadd.f32 %v2071_v33, %v5848_v1 }
 0x313   : > { %v2624_v54 = vadd.f32 %v2623_v12, %v2535_v40 }
 0x314   : > { %v2905_v59 = vadd.f32 %v5903_v2, %v2072_v30 }
 0x315   : > { %v3036_v20 = vadd.f32 %v5914_v8, %v2624_v54 }
 0x317   : > { %v4296_v16 = vpack.c.bf16 %v3036_v20, %v3035_v13 }
 0x318   : > { %v2448_v7 = vpop.f32.mrf.mxu2  ;;  %v2537_v55 = vpop.f32.mrf.mxu3 }
 0x319   : > { %4358 = vst [vmem:[%s5924_s1 + $0x58] sm:$0xff] %v4296_v16   ;;  %v2073_v50 = vpop.f32.mrf.mxu1  ;;  %v2628_v58 = vpop.f32.mrf.mxu0  ;;  %v2538_v0 = vadd.f32 %v2537_v55, %v2448_v7 }
 0x31a   : > { %v2074_v3 = vadd.f32 %v2073_v50, %v5852_v56 }
 0x31b   : > { %v2627_v41 = vadd.f32 %v2626_v29, %v2538_v0 }
 0x31c   : > { %v2906_v27 = vadd.f32 %v5903_v2, %v2074_v3 }
 0x31d   : > { %v3037_v48 = vadd.f32 %v5914_v8, %v2627_v41 }
 0x31e   : > { %v4221_v14 = vpack.c.bf16 %v2906_v27, %v2905_v59 }
 0x320   : > { %4344 = vst [vmem:[%s5909_s3 + $0x60] sm:$0xff] %v4221_v14   ;;  %v2450_v28 = vpop.f32.mrf.mxu2  ;;  %v2539_v43 = vpop.f32.mrf.mxu3 }
 0x321   : > { %v2540_v31 = vadd.f32 %v2539_v43, %v2450_v28  ;;  %v2076_v1 = vpop.f32.mrf.mxu1  ;;  %v2631_v42 = vpop.f32.mrf.mxu0 }
 0x322   : > { %v2077_v60 = vadd.f32 %v2076_v1, %v5861_v51 }
 0x323   : > { %v2629_v44 = vadd.f32 %v2628_v58, %v2540_v31 }
 0x324   : > { %v2907_v18 = vadd.f32 %v5903_v2, %v2077_v60 }
 0x325   : > { %v3038_v56 = vadd.f32 %v5914_v8, %v2629_v44 }
 0x327   : > { %v4301_v49 = vpack.c.bf16 %v3038_v56, %v3037_v48 }
 0x328   : > { %v2453_v5 = vpop.f32.mrf.mxu2  ;;  %v2542_v9 = vpop.f32.mrf.mxu3 }
 0x329   : > { %4359 = vst [vmem:[%s5924_s1 + $0x60] sm:$0xff] %v4301_v49   ;;  %v2078_v26 = vpop.f32.mrf.mxu1  ;;  %v2633_v21 = vpop.f32.mrf.mxu0  ;;  %v2543_v34 = vadd.f32 %v2542_v9, %v2453_v5 }
 0x32a   : > { %v2079_v32 = vadd.f32 %v2078_v26, %v5865_v62 }
 0x32b   : > { %v2632_v57 = vadd.f32 %v2631_v42, %v2543_v34 }
 0x32c   : > { %v2908_v25 = vadd.f32 %v5903_v2, %v2079_v32 }
 0x32d   : > { %v3039_v17 = vadd.f32 %v5914_v8, %v2632_v57 }
 0x32e   : > { %v4226_v35 = vpack.c.bf16 %v2908_v25, %v2907_v18 }
 0x330   : > { %4345 = vst [vmem:[%s5909_s3 + $0x68] sm:$0xff] %v4226_v35   ;;  %v2455_v37 = vpop.f32.mrf.mxu2  ;;  %v2544_v22 = vpop.f32.mrf.mxu3 }
 0x331   : > { %v2545_v38 = vadd.f32 %v2544_v22, %v2455_v37  ;;  %v2081_v51 = vpop.f32.mrf.mxu1  ;;  %v2636_v61 = vpop.f32.mrf.mxu0 }
 0x332   : > { %v2082_v24 = vadd.f32 %v2081_v51, %v5874_v19 }
 0x333   : > { %v2634_v53 = vadd.f32 %v2633_v21, %v2545_v38 }
 0x334   : > { %v2909_v39 = vadd.f32 %v5903_v2, %v2082_v24 }
 0x335   : > { %v3040_v62 = vadd.f32 %v5914_v8, %v2634_v53 }
 0x337   : > { %v4306_v15 = vpack.c.bf16 %v3040_v62, %v3039_v17 }
 0x338   : > { %v2458_v10 = vpop.f32.mrf.mxu2  ;;  %v2547_v12 = vpop.f32.mrf.mxu3 }
 0x339   : > { %4360 = vst [vmem:[%s5924_s1 + $0x68] sm:$0xff] %v4306_v15   ;;  %v2083_v52 = vpop.f32.mrf.mxu1  ;;  %v2548_v4 = vadd.f32 %v2547_v12, %v2458_v10  ;;  %v2638_v11 = vpop.f32.mrf.mxu0 }
 0x33a   : > { %v2084_v47 = vadd.f32 %v2083_v52, %v5878_v46 }
 0x33b   : > { %v2637_v19 = vadd.f32 %v2636_v61, %v2548_v4 }
 0x33c   : > { %v2910_v23 = vadd.f32 %v5903_v2, %v2084_v47 }
 0x33d   : > { %v3041_v13 = vadd.f32 %v5914_v8, %v2637_v19 }
 0x33e   : > { %v4231_v45 = vpack.c.bf16 %v2910_v23, %v2909_v39 }
 0x340   : > { %4346 = vst [vmem:[%s5909_s3 + $0x70] sm:$0xff] %v4231_v45   ;;  %v2460_v63 = vpop.f32.mrf.mxu2  ;;  %v2549_v40 = vpop.f32.mrf.mxu3 }
 0x341   : > { %v2550_v33 = vadd.f32 %v2549_v40, %v2460_v63  ;;  %v2086_v29 = vpop.f32.mrf.mxu1  ;;  %v2641_v16 = vpop.f32.mrf.mxu0 }
 0x342   : > { %v2087_v30 = vadd.f32 %v2086_v29, %v5887_v36 }
 0x343   : > { %v2639_v54 = vadd.f32 %v2638_v11, %v2550_v33 }
 0x344   : > { %v2911_v3 = vadd.f32 %v5903_v2, %v2087_v30 }
 0x345   : > { %v3042_v46 = vadd.f32 %v5914_v8, %v2639_v54 }
 0x347   : > { %v4311_v20 = vpack.c.bf16 %v3042_v46, %v3041_v13 }
 0x348   : > { %v2463_v7 = vpop.f32.mrf.mxu2  ;;  %v2552_v55 = vpop.f32.mrf.mxu3 }
 0x349   : > { %4361 = vst [vmem:[%s5924_s1 + $0x70] sm:$0xff] %v4311_v20   ;;  %v2088_v50 = vpop.f32.mrf.mxu1  ;;  %v2553_v59 = vadd.f32 %v2552_v55, %v2463_v7 }
 0x34a   : > { %v2089_v58 = vadd.f32 %v2088_v50, %v5891_v6 }
 0x34b   : > { %v2642_v6 = vadd.f32 %v2641_v16, %v2553_v59 }
 0x34c   : > { %v2912_v36 = vadd.f32 %v5903_v2, %v2089_v58 }
 0x34e   : > { %v4236_v27 = vpack.c.bf16 %v2912_v36, %v2911_v3 }
 0x350   : > { %4347 = vst [vmem:[%s5909_s3 + $0x78] sm:$0xff] %v4236_v27   ;;  %v2465_v0 = vpop.f32.mrf.mxu2  ;;  %v2554_v14 = vpop.f32.mrf.mxu3  ;;  %s4796_s3 = scalar_lea.hbm %s6381_s29, 768 }
 0x351   : > { %v2555_v28 = vadd.f32 %v2554_v14, %v2465_v0  ;;  %p4798_p4 = scmp.lt.s32.totalorder %s4796_s3, %s4792_s26 }
 0x353   : > { %p4799_p7 = por %p4798_p4, %p4797_p2 }
 0x355   : > { %p4800_p10 = pnand %p4799_p7, %p4795_p3 }
 0x357   : > { %4803 = shalt.err (!%p4800_p10)
}
 0x358   : > { %4410 = dma.vmem_to_hbm [thread:$0]  (%p5205_p0), %s3154_s12, 2048, %s3156_s14, %s3115_s21, %s4972_s15, %s4973_s4, %s4974_s11   ;;  %v2643_v2 = vpop.f32.mrf.mxu0  ;;  %v3043_v41 = vadd.f32 %v5914_v8, %v2642_v6 }
 0x359   : > { %v2644_v43 = vadd.f32 %v2643_v2, %v2555_v28  ;;  %s3174_s27 = sshll.u32 %s3171_s28, 4  ;;  %s3172_s9 = sshll.u32 %s5924_s1, 4  ;;  %s3175_s27 = int_to_ptr.hbm [resolvable:$true] %s3174_s27  ;;  %s3173_s9 = int_to_ptr.vmem [resolvable:$true] %s3172_s9 }
 0x35a   : > { %s4818_s30 = sshra.s32 %s3175_s27, 4  ;;  %s4824_s17 = scalar_lea.hbm %s6382_s6, 768  ;;  %s4819_s30 = int_to_ptr.hbm [resolvable:$true] %s4818_s30 }
 0x35b   : > { %v3044_v31 = vadd.f32 %v5914_v8, %v2644_v43  ;;  %s4820_s23 = scalar_lea.hbm %s4819_s30, 128  ;;  %p4825_p9 = scmp.lt.s32.totalorder %s4819_s30, %s6382_s6 }
 0x35c   : > { %p4821_p5 = scmp.ne.s32.totalorder %s4819_s30, %s4820_s23  ;;  %p4826_p11 = scmp.lt.s32.totalorder %s4824_s17, %s4820_s23 }
 0x35d   : > { %v4316_v1 = vpack.c.bf16 %v3044_v31, %v3043_v41 }
 0x35e   : > { %p4822_p6 = pnand %p4821_p5, %p5205_p0  ;;  %p4827_p12 = por %p4826_p11, %p4825_p9 }
 0x35f   : > { %4362 = vst [vmem:[%s5924_s1 + $0x78] sm:$0xff] %v4316_v1  }
 0x360   : > { %p4823_p8 = pneg %p4822_p6 }
 0x362   : > { %p4828_p1 = pnand %p4827_p12, %p4823_p8 }
 0x364   : > { %4831 = shalt.err (!%p4828_p1)
}
 0x365   : > { %4411 = dma.vmem_to_hbm [thread:$0]  (%p5205_p0), %s3173_s9, 2048, %s3175_s27, %s3115_s21, %s4972_s15, %s4973_s4, %s4974_s11  }
 0x366 PF: > { %s6383_s1 = sld [smem:[#allocation26_spill]]  ;;  %p4445_p3 = scmp.ge.s32.totalorder %s4966_s22, 2 }
 0x368   : > { %p4435_p2 = pnand %p4445_p3, %p5209_p13 }
 0x36a   : > { %p4436_p4 = pneg %p4435_p2 }
 0x36c   : > { %s3189_s26 = sand.u32 1, %s6383_s1  }
 0x36d   : > { %s3190_s16 = scalar_lea.sflag [#allocation7], %s3189_s26 }
 0x36e   : > { %4905 = dma.done.wait (%p4436_p4), %s3190_s16, 2048  }
 0x36f   : > { %4907 = vsyncadd (%p4436_p4), %s3190_s16, 4294965248  ;;  %s6385_s8 = sadd.s32 4294967294, %s4966_s22  }
 0x370   : > { %s3199_s5 = sand.u32 1, %s6385_s8  }
 0x371   : > { %s3200_s3 = scalar_lea.sflag [#allocation18], %s3199_s5 }
 0x372   : > { %4909 = dma.done.wait (%p4436_p4), %s3200_s3, 4096  }
 0x373   : > { %4911 = vsyncadd (%p4436_p4), %s3200_s3, 4294963200  ;;  %s38_s22 = sadd.s32 1, %s4966_s22   ;;  %s6387_s15 = sld [smem:[#allocation27_spill]] }
 0x374   : > { %p6151_p0 = scmp.ge.s32.totalorder %s38_s22, 8   ;;  %s6388_s11 = sld [smem:[#allocation39_spill]] }
 0x375   : > { %s6389_s4 = sld [smem:[#allocation28_spill]]  ;;  %s6397_s30 = smov %s4918_s10 }
 0x376   : > { %s6390_s14 = sld [smem:[#allocation37_spill]]  ;;  %s6399_s12 = smov %s4930_s13 }
 0x377   : > { %s6391_s21 = sld [smem:[#allocation29_spill]]  ;;  %s6402_s18 = smov %s4958_s20 }
 0x378   : > { %s6392_s16 = sld [smem:[#allocation30_spill]] }
 0x379   : > { %s6393_s17 = sld [smem:[#allocation38_spill]]  ;;  %s6398_s10 = smov %s6387_s15 }
 0x37a   : > { %s6394_s19 = sld [smem:[#allocation33_spill]] }
 0x37b   : > { %s6395_s0 = sld [smem:[#allocation34_spill]]  ;;  %s6400_s13 = smov %s6389_s4 }
 0x37c   : > { %s6396_s27 = sld [smem:[#allocation35_spill]] }
 0x37d   : > { %s6401_s15 = smov %s6391_s21 }
 0x37e   :  { %37 = sbr.rel (!%p6151_p0) target bundleno = 29 (0x1d), region = 197 }
 0x381   : > { %s6403_s20 = smov %s6395_s0 }
 0x382   : > { %s6404_s21 = smov %s6396_s27 }
 0x383   :  { %3216 = vsyncpa [#allocation6], 1 }
 0x384   :  { %3218 = vsyncpa [#allocation6 + $0x1], 1 }
 0x385   :  { %3219 = vsyncpa [#allocation9], 1 }
 0x386   :  { %3221 = vsyncpa [#allocation9 + $0x1], 1 }
 0x387   :  { %3222 = vsyncpa [#allocation12], 1 }
 0x388   :  { %3224 = vsyncpa [#allocation12 + $0x1], 1 }
 0x389   :  { %3225 = vsyncpa [#allocation15], 1 }
 0x38a   :  { %3227 = vsyncpa [#allocation15 + $0x1], 1 }
 0x38b   :  { %3228 = vsyncpa [#allocation7], 1 }
 0x38c   :  { %3230 = vsyncpa [#allocation7 + $0x1], 1 }
 0x38d   :  { %3231 = vsyncpa [#allocation18], 1 }
 0x38e   :  { %3233 = vsyncpa [#allocation18 + $0x1], 1 }

</bundles_post_ra>
